<compile_context>
chip_gen: v7x
topology: tpu7x:2x2x1
jax: 0.10.0
libtpu: 0.0.40
codegen_flags: <defaults>
</compile_context>

<pallas_src>
import math
import jax
import jax.numpy as jnp
from jax.experimental import pallas as pl
from jax.experimental.pallas import tpu as pltpu

KERNEL_SIZE = (2, 2)
STRIDE = (1, 1)
PADDING = (0, 0)
DILATION = (1, 1)
GRID_SIZE = 5
SPLINE_ORDER = 3
GRID_RANGE = (-1.0, 1.0)

IN_FEATURES = math.prod(KERNEL_SIZE)              # 4
NUM_KNOTS = GRID_SIZE + 2 * SPLINE_ORDER + 1      # 12
NUM_BASES = GRID_SIZE + SPLINE_ORDER              # 8
GRID_H = (GRID_RANGE[1] - GRID_RANGE[0]) / GRID_SIZE
# Uniform knot grid (same for every feature) -> compile-time constants.
KNOTS = tuple(GRID_RANGE[0] + (i - SPLINE_ORDER) * GRID_H for i in range(NUM_KNOTS))

LANES = 128       # lane width of the patch slab
MAX_ROWS = 256    # sublane rows per grid step (=> up to 32768 patches per step)
CHUNK = 8         # sublane rows per in-kernel chunk (bounds vreg pressure)


# ----------------------------- Pallas kernel --------------------------------
def _kan_linear_kernel(bw_ref, sw_ref, x_ref, o_ref):
    # bw_ref: SMEM (IN_FEATURES,)             base weights (out_features == 1)
    # sw_ref: SMEM (NUM_BASES*IN_FEATURES,)   scaled spline weights, index [b*IN + f]
    # x_ref : VMEM (IN_FEATURES, TM, 128)     patch values, one full plane per feature
    # o_ref : VMEM (TM, 128)                  per-patch KANLinear output
    tm = x_ref.shape[1]

    # Hoist the 36 scalar weights out of the chunk loop.
    bw = [bw_ref[f] for f in range(IN_FEATURES)]
    sw = [sw_ref[i] for i in range(NUM_BASES * IN_FEATURES)]

    @pl.loop(0, tm // CHUNK)
    def _(j):
        r0 = pl.multiple_of(j * CHUNK, CHUNK)
        x = x_ref[:, pl.ds(r0, CHUNK), :]                 # (IN, CHUNK, 128)

        # SiLU base activation (sigmoid goes to the EUP slot).
        silu = x * jax.nn.sigmoid(x)

        # Order-0 bases: half-open knot-interval indicators (knots are immediates).
        bases = [
            ((x >= KNOTS[i]) & (x < KNOTS[i + 1])).astype(jnp.float32)
            for i in range(NUM_KNOTS - 1)
        ]
        # Cox-de Boor recursion.  Uniform grid -> every denominator equals k*h, so the
        # divides become compile-time 1/(k*h) multiplies folded into scaled knots.
        for k in range(1, SPLINE_ORDER + 1):
            inv = 1.0 / (k * GRID_H)
            xs = x * inv
            bases = [
                (xs - KNOTS[i] * inv) * bases[i]
                + (KNOTS[i + k + 1] * inv - xs) * bases[i + 1]
                for i in range(len(bases) - 1)
            ]
        # bases: NUM_BASES tensors of shape (IN, CHUNK, 128)

        # out = sum_f bw[f]*SiLU(x_f) + sum_{b,f} sw[b,f]*B_{b}(x_f)
        # Pure scalar-broadcast multiply-adds on full vregs; no cross-lane/sublane work.
        acc = bw[0] * silu[0]
        for f in range(1, IN_FEATURES):
            acc = acc + bw[f] * silu[f]
        for b in range(NUM_BASES):
            for f in range(IN_FEATURES):
                acc = acc + sw[b * IN_FEATURES + f] * bases[b][f]

        o_ref[pl.ds(r0, CHUNK), :] = acc


def kan_linear_pallas(x_feat, base_w, spline_w_flat):
    """x_feat: (IN_FEATURES, N) -> (N,) KANLinear(out_features=1) output per patch."""
    in_f, n = x_feat.shape
    rows = pl.cdiv(n, LANES)
    tm = min(MAX_ROWS, max(CHUNK, pl.cdiv(rows, CHUNK) * CHUNK))
    rows_pad = pl.cdiv(rows, tm) * tm
    n_pad = rows_pad * LANES
    x_p = jnp.pad(x_feat, ((0, 0), (0, n_pad - n))).reshape(in_f, rows_pad, LANES)

    out = pl.pallas_call(
        _kan_linear_kernel,
        out_shape=jax.ShapeDtypeStruct((rows_pad, LANES), jnp.float32),
        grid_spec=pltpu.PrefetchScalarGridSpec(
            num_scalar_prefetch=0,
            grid=(rows_pad // tm,),
            in_specs=[
                pl.BlockSpec(memory_space=pltpu.MemorySpace.SMEM),   # base weights
                pl.BlockSpec(memory_space=pltpu.MemorySpace.SMEM),   # spline weights
                pl.BlockSpec((in_f, tm, LANES), lambda i: (0, i, 0)),
            ],
            out_specs=pl.BlockSpec((tm, LANES), lambda i: (i, 0)),
        ),
        compiler_params=pltpu.CompilerParams(
            dimension_semantics=("parallel",),
            vmem_limit_bytes=32 * 1024 * 1024,
        ),
    )(base_w, spline_w_flat, x_p)
    return out.reshape(n_pad)[:n]


# ------------------------------- JAX glue ------------------------------------
def extract_patches(x):
    """torch.nn.Unfold((kh,kw)) per channel, emitted feature-major: (kh*kw, B*C*L)."""
    B, C, H, W = x.shape
    kh, kw = KERNEL_SIZE
    dh, dw = DILATION
    s_h, s_w = STRIDE
    h_out = (H + 2 * PADDING[0] - dh * (kh - 1) - 1) // s_h + 1
    w_out = (W + 2 * PADDING[1] - dw * (kw - 1) - 1) // s_w + 1
    cols = []
    for ki in range(kh):
        for kj in range(kw):
            cols.append(
                x[:, :,
                  ki * dh: ki * dh + s_h * (h_out - 1) + 1: s_h,
                  kj * dw: kj * dw + s_w * (w_out - 1) + 1: s_w]
            )
    patches = jnp.stack(cols, axis=0)               # (kh*kw, B, C, h_out, w_out)
    return patches.reshape(kh * kw, B * C * h_out * w_out), h_out, w_out


def kan_convolution_forward(x, params):
    """x: (B, C, H, W) float32 NCHW (same as the PyTorch module) -> (B, C, H_out, W_out)."""
    x_feat, h_out, w_out = extract_patches(x)
    B, C = x.shape[0], x.shape[1]
    out = kan_linear_pallas(x_feat, params["base_w"], params["spline_w_flat"])
    return out.reshape(B, C, h_out, w_out)


def init_params(key):
    # Synthetic init with the same parameter shapes as KANLinear(in=4, out=1, grid=5, k=3).
    # TODO(synk): the PyTorch kaiming + noise curve-fit initialization is not reproduced;
    # only the forward math matters here.
    k1, k2, k3 = jax.random.split(key, 3)
    base_w = jax.random.uniform(k1, (IN_FEATURES,), jnp.float32, -0.5, 0.5)
    spline_w = jax.random.uniform(k2, (IN_FEATURES, NUM_BASES), jnp.float32, -0.1, 0.1)
    spline_scaler = jax.random.uniform(k3, (IN_FEATURES,), jnp.float32, -0.5, 0.5)
    scaled = spline_w * spline_scaler[:, None]       # (IN, NUM_BASES)
    return {
        "base_w": base_w,                            # (IN,)
        "spline_w": scaled,                          # (IN, NUM_BASES)  (reference)
        "spline_w_flat": scaled.T.reshape(-1),       # (NUM_BASES*IN,)  (kernel SMEM)
    }


# ------------------------ pure-JAX reference (check) --------------------------
def _kan_linear_ref(xt, base_w, spline_w):
    # xt: (N, IN).  Classic efficient-KAN recursion with runtime knots and divides.
    knots = (jnp.arange(-SPLINE_ORDER, GRID_SIZE + SPLINE_ORDER + 1, dtype=jnp.float32)
             * GRID_H + GRID_RANGE[0])                        # (NUM_KNOTS,)
    g = jnp.tile(knots[None, :], (IN_FEATURES, 1))[None]      # (1, IN, K)
    xe = xt[:, :, None]
    bases = ((xe >= g[:, :, :-1]) & (xe < g[:, :, 1:])).astype(jnp.float32)
    for k in range(1, SPLINE_ORDER + 1):
        bases = ((xe - g[:, :, : -(k + 1)]) / (g[:, :, k:-1] - g[:, :, : -(k + 1)]) * bases[:, :, :-1]
                 + (g[:, :, k + 1:] - xe) / (g[:, :, k + 1:] - g[:, :, 1:-k]) * bases[:, :, 1:])
    silu = xt * jax.nn.sigmoid(xt)
    return silu @ base_w + jnp.sum(bases * spline_w[None], axis=(1, 2))


def _forward_ref(x, params):
    x_feat, h_out, w_out = extract_patches(x)
    B, C = x.shape[0], x.shape[1]
    out = _kan_linear_ref(x_feat.T, params["base_w"], params["spline_w"])
    return out.reshape(B, C, h_out, w_out)


if __name__ == "__main__":
    key = jax.random.PRNGKey(0)
    kx, kp = jax.random.split(key)
    x = jax.random.normal(kx, (2, 4, 16, 16), dtype=jnp.float32)   # NCHW, like the module
    params = init_params(kp)

    out = jax.block_until_ready(kan_convolution_forward(x, params))
    ref = jax.block_until_ready(_forward_ref(x, params))

    assert out.shape == (2, 4, 15, 15), out.shape
    err = float(jnp.max(jnp.abs(out - ref)))
    assert err < 1e-4, err
    print("KERNEL_OK")
</pallas_src>

<mosaic_0001>
module attributes {stable_mosaic.version = 11 : i64} {
  func.func @_kan_linear_kernel(%arg0: i32, %arg1: memref<4xf32, #tpu.memory_space<smem>>, %arg2: memref<32xf32, #tpu.memory_space<smem>>, %arg3: memref<4x16x128xf32, #tpu.memory_space<vmem>>, %arg4: memref<16x128xf32, #tpu.memory_space<vmem>>) attributes {dimension_semantics = [#tpu.dimension_semantics<parallel>], iteration_bounds = array<i64: 1>, scalar_prefetch = 0 : i64, scratch_operands = 0 : i64, tpu.core_type = #tpu.core_type<tc>, window_params = [{transform_indices = @transform_0, window_bounds = array<i64: 4>}, {transform_indices = @transform_1, window_bounds = array<i64: 32>}, {transform_indices = @transform_2, window_bounds = array<i64: 4, 16, 128>}, {transform_indices = @transform_3, window_bounds = array<i64: 16, 128>}]} {
    %c0 = arith.constant 0 : index
    %0 = memref.load %arg1[%c0] : memref<4xf32, #tpu.memory_space<smem>>
    %c1 = arith.constant 1 : index
    %1 = memref.load %arg1[%c1] : memref<4xf32, #tpu.memory_space<smem>>
    %c2 = arith.constant 2 : index
    %2 = memref.load %arg1[%c2] : memref<4xf32, #tpu.memory_space<smem>>
    %c3 = arith.constant 3 : index
    %3 = memref.load %arg1[%c3] : memref<4xf32, #tpu.memory_space<smem>>
    %c0_0 = arith.constant 0 : index
    %4 = memref.load %arg2[%c0_0] : memref<32xf32, #tpu.memory_space<smem>>
    %c1_1 = arith.constant 1 : index
    %5 = memref.load %arg2[%c1_1] : memref<32xf32, #tpu.memory_space<smem>>
    %c2_2 = arith.constant 2 : index
    %6 = memref.load %arg2[%c2_2] : memref<32xf32, #tpu.memory_space<smem>>
    %c3_3 = arith.constant 3 : index
    %7 = memref.load %arg2[%c3_3] : memref<32xf32, #tpu.memory_space<smem>>
    %c4 = arith.constant 4 : index
    %8 = memref.load %arg2[%c4] : memref<32xf32, #tpu.memory_space<smem>>
    %c5 = arith.constant 5 : index
    %9 = memref.load %arg2[%c5] : memref<32xf32, #tpu.memory_space<smem>>
    %c6 = arith.constant 6 : index
    %10 = memref.load %arg2[%c6] : memref<32xf32, #tpu.memory_space<smem>>
    %c7 = arith.constant 7 : index
    %11 = memref.load %arg2[%c7] : memref<32xf32, #tpu.memory_space<smem>>
    %c8 = arith.constant 8 : index
    %12 = memref.load %arg2[%c8] : memref<32xf32, #tpu.memory_space<smem>>
    %c9 = arith.constant 9 : index
    %13 = memref.load %arg2[%c9] : memref<32xf32, #tpu.memory_space<smem>>
    %c10 = arith.constant 10 : index
    %14 = memref.load %arg2[%c10] : memref<32xf32, #tpu.memory_space<smem>>
    %c11 = arith.constant 11 : index
    %15 = memref.load %arg2[%c11] : memref<32xf32, #tpu.memory_space<smem>>
    %c12 = arith.constant 12 : index
    %16 = memref.load %arg2[%c12] : memref<32xf32, #tpu.memory_space<smem>>
    %c13 = arith.constant 13 : index
    %17 = memref.load %arg2[%c13] : memref<32xf32, #tpu.memory_space<smem>>
    %c14 = arith.constant 14 : index
    %18 = memref.load %arg2[%c14] : memref<32xf32, #tpu.memory_space<smem>>
    %c15 = arith.constant 15 : index
    %19 = memref.load %arg2[%c15] : memref<32xf32, #tpu.memory_space<smem>>
    %c16 = arith.constant 16 : index
    %20 = memref.load %arg2[%c16] : memref<32xf32, #tpu.memory_space<smem>>
    %c17 = arith.constant 17 : index
    %21 = memref.load %arg2[%c17] : memref<32xf32, #tpu.memory_space<smem>>
    %c18 = arith.constant 18 : index
    %22 = memref.load %arg2[%c18] : memref<32xf32, #tpu.memory_space<smem>>
    %c19 = arith.constant 19 : index
    %23 = memref.load %arg2[%c19] : memref<32xf32, #tpu.memory_space<smem>>
    %c20 = arith.constant 20 : index
    %24 = memref.load %arg2[%c20] : memref<32xf32, #tpu.memory_space<smem>>
    %c21 = arith.constant 21 : index
    %25 = memref.load %arg2[%c21] : memref<32xf32, #tpu.memory_space<smem>>
    %c22 = arith.constant 22 : index
    %26 = memref.load %arg2[%c22] : memref<32xf32, #tpu.memory_space<smem>>
    %c23 = arith.constant 23 : index
    %27 = memref.load %arg2[%c23] : memref<32xf32, #tpu.memory_space<smem>>
    %c24 = arith.constant 24 : index
    %28 = memref.load %arg2[%c24] : memref<32xf32, #tpu.memory_space<smem>>
    %c25 = arith.constant 25 : index
    %29 = memref.load %arg2[%c25] : memref<32xf32, #tpu.memory_space<smem>>
    %c26 = arith.constant 26 : index
    %30 = memref.load %arg2[%c26] : memref<32xf32, #tpu.memory_space<smem>>
    %c27 = arith.constant 27 : index
    %31 = memref.load %arg2[%c27] : memref<32xf32, #tpu.memory_space<smem>>
    %c28 = arith.constant 28 : index
    %32 = memref.load %arg2[%c28] : memref<32xf32, #tpu.memory_space<smem>>
    %c29 = arith.constant 29 : index
    %33 = memref.load %arg2[%c29] : memref<32xf32, #tpu.memory_space<smem>>
    %c30 = arith.constant 30 : index
    %34 = memref.load %arg2[%c30] : memref<32xf32, #tpu.memory_space<smem>>
    %c31 = arith.constant 31 : index
    %35 = memref.load %arg2[%c31] : memref<32xf32, #tpu.memory_space<smem>>
    %c0_i32 = arith.constant 0 : i32
    %c2_i32 = arith.constant 2 : i32
    %36 = arith.addi %c0_i32, %c2_i32 : i32
    %c1_i32 = arith.constant 1 : i32
    scf.for %arg5 = %c0_i32 to %36 step %c1_i32  : i32 {
      %c1_i32_5 = arith.constant 1 : i32
      %37 = arith.muli %arg5, %c1_i32_5 : i32
      %c0_i32_6 = arith.constant 0 : i32
      %38 = arith.addi %c0_i32_6, %37 : i32
      %c8_i32 = arith.constant 8 : i32
      %39 = arith.muli %38, %c8_i32 : i32
      %40 = tpu.assume_multiple %39, 8 : i32
      %c0_7 = arith.constant 0 : index
      %41 = arith.index_cast %40 : i32 to index
      %c0_8 = arith.constant 0 : index
      %42 = vector.load %arg3[%c0_7, %41, %c0_8] : memref<4x16x128xf32, #tpu.memory_space<vmem>>, vector<4x8x128xf32>
      %43 = arith.negf %42 : vector<4x8x128xf32>
      %44 = math.exp %43 : vector<4x8x128xf32>
      %cst = arith.constant 1.000000e+00 : f32
      %45 = vector.broadcast %cst : f32 to vector<4x8x128xf32>
      %46 = arith.addf %45, %44 : vector<4x8x128xf32>
      %47 = arith.divf %45, %46 : vector<4x8x128xf32>
      %48 = arith.mulf %42, %47 : vector<4x8x128xf32>
      %cst_9 = arith.constant -2.200000e+00 : f32
      %49 = vector.broadcast %cst_9 : f32 to vector<4x8x128xf32>
      %50 = arith.cmpf oge, %42, %49 : vector<4x8x128xf32>
      %cst_10 = arith.constant -1.800000e+00 : f32
      %51 = vector.broadcast %cst_10 : f32 to vector<4x8x128xf32>
      %52 = arith.cmpf olt, %42, %51 : vector<4x8x128xf32>
      %53 = arith.andi %50, %52 : vector<4x8x128xi1>
      %54 = arith.extui %53 : vector<4x8x128xi1> to vector<4x8x128xi32>
      %55 = arith.sitofp %54 : vector<4x8x128xi32> to vector<4x8x128xf32>
      %cst_11 = arith.constant -1.800000e+00 : f32
      %56 = vector.broadcast %cst_11 : f32 to vector<4x8x128xf32>
      %57 = arith.cmpf oge, %42, %56 : vector<4x8x128xf32>
      %cst_12 = arith.constant -1.400000e+00 : f32
      %58 = vector.broadcast %cst_12 : f32 to vector<4x8x128xf32>
      %59 = arith.cmpf olt, %42, %58 : vector<4x8x128xf32>
      %60 = arith.andi %57, %59 : vector<4x8x128xi1>
      %61 = arith.extui %60 : vector<4x8x128xi1> to vector<4x8x128xi32>
      %62 = arith.sitofp %61 : vector<4x8x128xi32> to vector<4x8x128xf32>
      %cst_13 = arith.constant -1.400000e+00 : f32
      %63 = vector.broadcast %cst_13 : f32 to vector<4x8x128xf32>
      %64 = arith.cmpf oge, %42, %63 : vector<4x8x128xf32>
      %cst_14 = arith.constant -1.000000e+00 : f32
      %65 = vector.broadcast %cst_14 : f32 to vector<4x8x128xf32>
      %66 = arith.cmpf olt, %42, %65 : vector<4x8x128xf32>
      %67 = arith.andi %64, %66 : vector<4x8x128xi1>
      %68 = arith.extui %67 : vector<4x8x128xi1> to vector<4x8x128xi32>
      %69 = arith.sitofp %68 : vector<4x8x128xi32> to vector<4x8x128xf32>
      %cst_15 = arith.constant -1.000000e+00 : f32
      %70 = vector.broadcast %cst_15 : f32 to vector<4x8x128xf32>
      %71 = arith.cmpf oge, %42, %70 : vector<4x8x128xf32>
      %cst_16 = arith.constant -6.000000e-01 : f32
      %72 = vector.broadcast %cst_16 : f32 to vector<4x8x128xf32>
      %73 = arith.cmpf olt, %42, %72 : vector<4x8x128xf32>
      %74 = arith.andi %71, %73 : vector<4x8x128xi1>
      %75 = arith.extui %74 : vector<4x8x128xi1> to vector<4x8x128xi32>
      %76 = arith.sitofp %75 : vector<4x8x128xi32> to vector<4x8x128xf32>
      %cst_17 = arith.constant -6.000000e-01 : f32
      %77 = vector.broadcast %cst_17 : f32 to vector<4x8x128xf32>
      %78 = arith.cmpf oge, %42, %77 : vector<4x8x128xf32>
      %cst_18 = arith.constant -2.000000e-01 : f32
      %79 = vector.broadcast %cst_18 : f32 to vector<4x8x128xf32>
      %80 = arith.cmpf olt, %42, %79 : vector<4x8x128xf32>
      %81 = arith.andi %78, %80 : vector<4x8x128xi1>
      %82 = arith.extui %81 : vector<4x8x128xi1> to vector<4x8x128xi32>
      %83 = arith.sitofp %82 : vector<4x8x128xi32> to vector<4x8x128xf32>
      %cst_19 = arith.constant -2.000000e-01 : f32
      %84 = vector.broadcast %cst_19 : f32 to vector<4x8x128xf32>
      %85 = arith.cmpf oge, %42, %84 : vector<4x8x128xf32>
      %cst_20 = arith.constant 2.000000e-01 : f32
      %86 = vector.broadcast %cst_20 : f32 to vector<4x8x128xf32>
      %87 = arith.cmpf olt, %42, %86 : vector<4x8x128xf32>
      %88 = arith.andi %85, %87 : vector<4x8x128xi1>
      %89 = arith.extui %88 : vector<4x8x128xi1> to vector<4x8x128xi32>
      %90 = arith.sitofp %89 : vector<4x8x128xi32> to vector<4x8x128xf32>
      %cst_21 = arith.constant 2.000000e-01 : f32
      %91 = vector.broadcast %cst_21 : f32 to vector<4x8x128xf32>
      %92 = arith.cmpf oge, %42, %91 : vector<4x8x128xf32>
      %cst_22 = arith.constant 6.000000e-01 : f32
      %93 = vector.broadcast %cst_22 : f32 to vector<4x8x128xf32>
      %94 = arith.cmpf olt, %42, %93 : vector<4x8x128xf32>
      %95 = arith.andi %92, %94 : vector<4x8x128xi1>
      %96 = arith.extui %95 : vector<4x8x128xi1> to vector<4x8x128xi32>
      %97 = arith.sitofp %96 : vector<4x8x128xi32> to vector<4x8x128xf32>
      %cst_23 = arith.constant 6.000000e-01 : f32
      %98 = vector.broadcast %cst_23 : f32 to vector<4x8x128xf32>
      %99 = arith.cmpf oge, %42, %98 : vector<4x8x128xf32>
      %cst_24 = arith.constant 1.000000e+00 : f32
      %100 = vector.broadcast %cst_24 : f32 to vector<4x8x128xf32>
      %101 = arith.cmpf olt, %42, %100 : vector<4x8x128xf32>
      %102 = arith.andi %99, %101 : vector<4x8x128xi1>
      %103 = arith.extui %102 : vector<4x8x128xi1> to vector<4x8x128xi32>
      %104 = arith.sitofp %103 : vector<4x8x128xi32> to vector<4x8x128xf32>
      %cst_25 = arith.constant 1.000000e+00 : f32
      %105 = vector.broadcast %cst_25 : f32 to vector<4x8x128xf32>
      %106 = arith.cmpf oge, %42, %105 : vector<4x8x128xf32>
      %cst_26 = arith.constant 1.400000e+00 : f32
      %107 = vector.broadcast %cst_26 : f32 to vector<4x8x128xf32>
      %108 = arith.cmpf olt, %42, %107 : vector<4x8x128xf32>
      %109 = arith.andi %106, %108 : vector<4x8x128xi1>
      %110 = arith.extui %109 : vector<4x8x128xi1> to vector<4x8x128xi32>
      %111 = arith.sitofp %110 : vector<4x8x128xi32> to vector<4x8x128xf32>
      %cst_27 = arith.constant 1.400000e+00 : f32
      %112 = vector.broadcast %cst_27 : f32 to vector<4x8x128xf32>
      %113 = arith.cmpf oge, %42, %112 : vector<4x8x128xf32>
      %cst_28 = arith.constant 1.800000e+00 : f32
      %114 = vector.broadcast %cst_28 : f32 to vector<4x8x128xf32>
      %115 = arith.cmpf olt, %42, %114 : vector<4x8x128xf32>
      %116 = arith.andi %113, %115 : vector<4x8x128xi1>
      %117 = arith.extui %116 : vector<4x8x128xi1> to vector<4x8x128xi32>
      %118 = arith.sitofp %117 : vector<4x8x128xi32> to vector<4x8x128xf32>
      %cst_29 = arith.constant 1.800000e+00 : f32
      %119 = vector.broadcast %cst_29 : f32 to vector<4x8x128xf32>
      %120 = arith.cmpf oge, %42, %119 : vector<4x8x128xf32>
      %cst_30 = arith.constant 2.200000e+00 : f32
      %121 = vector.broadcast %cst_30 : f32 to vector<4x8x128xf32>
      %122 = arith.cmpf olt, %42, %121 : vector<4x8x128xf32>
      %123 = arith.andi %120, %122 : vector<4x8x128xi1>
      %124 = arith.extui %123 : vector<4x8x128xi1> to vector<4x8x128xi32>
      %125 = arith.sitofp %124 : vector<4x8x128xi32> to vector<4x8x128xf32>
      %cst_31 = arith.constant 2.500000e+00 : f32
      %126 = vector.broadcast %cst_31 : f32 to vector<4x8x128xf32>
      %127 = arith.mulf %42, %126 : vector<4x8x128xf32>
      %cst_32 = arith.constant -5.500000e+00 : f32
      %128 = vector.broadcast %cst_32 : f32 to vector<4x8x128xf32>
      %129 = arith.subf %127, %128 : vector<4x8x128xf32>
      %130 = arith.mulf %129, %55 : vector<4x8x128xf32>
      %cst_33 = arith.constant -3.500000e+00 : f32
      %131 = vector.broadcast %cst_33 : f32 to vector<4x8x128xf32>
      %132 = arith.subf %131, %127 : vector<4x8x128xf32>
      %133 = arith.mulf %132, %62 : vector<4x8x128xf32>
      %134 = arith.addf %130, %133 : vector<4x8x128xf32>
      %cst_34 = arith.constant -4.500000e+00 : f32
      %135 = vector.broadcast %cst_34 : f32 to vector<4x8x128xf32>
      %136 = arith.subf %127, %135 : vector<4x8x128xf32>
      %137 = arith.mulf %136, %62 : vector<4x8x128xf32>
      %cst_35 = arith.constant -2.500000e+00 : f32
      %138 = vector.broadcast %cst_35 : f32 to vector<4x8x128xf32>
      %139 = arith.subf %138, %127 : vector<4x8x128xf32>
      %140 = arith.mulf %139, %69 : vector<4x8x128xf32>
      %141 = arith.addf %137, %140 : vector<4x8x128xf32>
      %cst_36 = arith.constant -3.500000e+00 : f32
      %142 = vector.broadcast %cst_36 : f32 to vector<4x8x128xf32>
      %143 = arith.subf %127, %142 : vector<4x8x128xf32>
      %144 = arith.mulf %143, %69 : vector<4x8x128xf32>
      %cst_37 = arith.constant -1.500000e+00 : f32
      %145 = vector.broadcast %cst_37 : f32 to vector<4x8x128xf32>
      %146 = arith.subf %145, %127 : vector<4x8x128xf32>
      %147 = arith.mulf %146, %76 : vector<4x8x128xf32>
      %148 = arith.addf %144, %147 : vector<4x8x128xf32>
      %cst_38 = arith.constant -2.500000e+00 : f32
      %149 = vector.broadcast %cst_38 : f32 to vector<4x8x128xf32>
      %150 = arith.subf %127, %149 : vector<4x8x128xf32>
      %151 = arith.mulf %150, %76 : vector<4x8x128xf32>
      %cst_39 = arith.constant -5.000000e-01 : f32
      %152 = vector.broadcast %cst_39 : f32 to vector<4x8x128xf32>
      %153 = arith.subf %152, %127 : vector<4x8x128xf32>
      %154 = arith.mulf %153, %83 : vector<4x8x128xf32>
      %155 = arith.addf %151, %154 : vector<4x8x128xf32>
      %cst_40 = arith.constant -1.500000e+00 : f32
      %156 = vector.broadcast %cst_40 : f32 to vector<4x8x128xf32>
      %157 = arith.subf %127, %156 : vector<4x8x128xf32>
      %158 = arith.mulf %157, %83 : vector<4x8x128xf32>
      %cst_41 = arith.constant 5.000000e-01 : f32
      %159 = vector.broadcast %cst_41 : f32 to vector<4x8x128xf32>
      %160 = arith.subf %159, %127 : vector<4x8x128xf32>
      %161 = arith.mulf %160, %90 : vector<4x8x128xf32>
      %162 = arith.addf %158, %161 : vector<4x8x128xf32>
      %cst_42 = arith.constant -5.000000e-01 : f32
      %163 = vector.broadcast %cst_42 : f32 to vector<4x8x128xf32>
      %164 = arith.subf %127, %163 : vector<4x8x128xf32>
      %165 = arith.mulf %164, %90 : vector<4x8x128xf32>
      %cst_43 = arith.constant 1.500000e+00 : f32
      %166 = vector.broadcast %cst_43 : f32 to vector<4x8x128xf32>
      %167 = arith.subf %166, %127 : vector<4x8x128xf32>
      %168 = arith.mulf %167, %97 : vector<4x8x128xf32>
      %169 = arith.addf %165, %168 : vector<4x8x128xf32>
      %cst_44 = arith.constant 5.000000e-01 : f32
      %170 = vector.broadcast %cst_44 : f32 to vector<4x8x128xf32>
      %171 = arith.subf %127, %170 : vector<4x8x128xf32>
      %172 = arith.mulf %171, %97 : vector<4x8x128xf32>
      %cst_45 = arith.constant 2.500000e+00 : f32
      %173 = vector.broadcast %cst_45 : f32 to vector<4x8x128xf32>
      %174 = arith.subf %173, %127 : vector<4x8x128xf32>
      %175 = arith.mulf %174, %104 : vector<4x8x128xf32>
      %176 = arith.addf %172, %175 : vector<4x8x128xf32>
      %cst_46 = arith.constant 1.500000e+00 : f32
      %177 = vector.broadcast %cst_46 : f32 to vector<4x8x128xf32>
      %178 = arith.subf %127, %177 : vector<4x8x128xf32>
      %179 = arith.mulf %178, %104 : vector<4x8x128xf32>
      %cst_47 = arith.constant 3.500000e+00 : f32
      %180 = vector.broadcast %cst_47 : f32 to vector<4x8x128xf32>
      %181 = arith.subf %180, %127 : vector<4x8x128xf32>
      %182 = arith.mulf %181, %111 : vector<4x8x128xf32>
      %183 = arith.addf %179, %182 : vector<4x8x128xf32>
      %cst_48 = arith.constant 2.500000e+00 : f32
      %184 = vector.broadcast %cst_48 : f32 to vector<4x8x128xf32>
      %185 = arith.subf %127, %184 : vector<4x8x128xf32>
      %186 = arith.mulf %185, %111 : vector<4x8x128xf32>
      %cst_49 = arith.constant 4.500000e+00 : f32
      %187 = vector.broadcast %cst_49 : f32 to vector<4x8x128xf32>
      %188 = arith.subf %187, %127 : vector<4x8x128xf32>
      %189 = arith.mulf %188, %118 : vector<4x8x128xf32>
      %190 = arith.addf %186, %189 : vector<4x8x128xf32>
      %cst_50 = arith.constant 3.500000e+00 : f32
      %191 = vector.broadcast %cst_50 : f32 to vector<4x8x128xf32>
      %192 = arith.subf %127, %191 : vector<4x8x128xf32>
      %193 = arith.mulf %192, %118 : vector<4x8x128xf32>
      %cst_51 = arith.constant 5.500000e+00 : f32
      %194 = vector.broadcast %cst_51 : f32 to vector<4x8x128xf32>
      %195 = arith.subf %194, %127 : vector<4x8x128xf32>
      %196 = arith.mulf %195, %125 : vector<4x8x128xf32>
      %197 = arith.addf %193, %196 : vector<4x8x128xf32>
      %cst_52 = arith.constant 1.250000e+00 : f32
      %198 = vector.broadcast %cst_52 : f32 to vector<4x8x128xf32>
      %199 = arith.mulf %42, %198 : vector<4x8x128xf32>
      %cst_53 = arith.constant -2.750000e+00 : f32
      %200 = vector.broadcast %cst_53 : f32 to vector<4x8x128xf32>
      %201 = arith.subf %199, %200 : vector<4x8x128xf32>
      %202 = arith.mulf %201, %134 : vector<4x8x128xf32>
      %cst_54 = arith.constant -1.250000e+00 : f32
      %203 = vector.broadcast %cst_54 : f32 to vector<4x8x128xf32>
      %204 = arith.subf %203, %199 : vector<4x8x128xf32>
      %205 = arith.mulf %204, %141 : vector<4x8x128xf32>
      %206 = arith.addf %202, %205 : vector<4x8x128xf32>
      %cst_55 = arith.constant -2.250000e+00 : f32
      %207 = vector.broadcast %cst_55 : f32 to vector<4x8x128xf32>
      %208 = arith.subf %199, %207 : vector<4x8x128xf32>
      %209 = arith.mulf %208, %141 : vector<4x8x128xf32>
      %cst_56 = arith.constant -7.500000e-01 : f32
      %210 = vector.broadcast %cst_56 : f32 to vector<4x8x128xf32>
      %211 = arith.subf %210, %199 : vector<4x8x128xf32>
      %212 = arith.mulf %211, %148 : vector<4x8x128xf32>
      %213 = arith.addf %209, %212 : vector<4x8x128xf32>
      %cst_57 = arith.constant -1.750000e+00 : f32
      %214 = vector.broadcast %cst_57 : f32 to vector<4x8x128xf32>
      %215 = arith.subf %199, %214 : vector<4x8x128xf32>
      %216 = arith.mulf %215, %148 : vector<4x8x128xf32>
      %cst_58 = arith.constant -2.500000e-01 : f32
      %217 = vector.broadcast %cst_58 : f32 to vector<4x8x128xf32>
      %218 = arith.subf %217, %199 : vector<4x8x128xf32>
      %219 = arith.mulf %218, %155 : vector<4x8x128xf32>
      %220 = arith.addf %216, %219 : vector<4x8x128xf32>
      %cst_59 = arith.constant -1.250000e+00 : f32
      %221 = vector.broadcast %cst_59 : f32 to vector<4x8x128xf32>
      %222 = arith.subf %199, %221 : vector<4x8x128xf32>
      %223 = arith.mulf %222, %155 : vector<4x8x128xf32>
      %cst_60 = arith.constant 2.500000e-01 : f32
      %224 = vector.broadcast %cst_60 : f32 to vector<4x8x128xf32>
      %225 = arith.subf %224, %199 : vector<4x8x128xf32>
      %226 = arith.mulf %225, %162 : vector<4x8x128xf32>
      %227 = arith.addf %223, %226 : vector<4x8x128xf32>
      %cst_61 = arith.constant -7.500000e-01 : f32
      %228 = vector.broadcast %cst_61 : f32 to vector<4x8x128xf32>
      %229 = arith.subf %199, %228 : vector<4x8x128xf32>
      %230 = arith.mulf %229, %162 : vector<4x8x128xf32>
      %cst_62 = arith.constant 7.500000e-01 : f32
      %231 = vector.broadcast %cst_62 : f32 to vector<4x8x128xf32>
      %232 = arith.subf %231, %199 : vector<4x8x128xf32>
      %233 = arith.mulf %232, %169 : vector<4x8x128xf32>
      %234 = arith.addf %230, %233 : vector<4x8x128xf32>
      %cst_63 = arith.constant -2.500000e-01 : f32
      %235 = vector.broadcast %cst_63 : f32 to vector<4x8x128xf32>
      %236 = arith.subf %199, %235 : vector<4x8x128xf32>
      %237 = arith.mulf %236, %169 : vector<4x8x128xf32>
      %cst_64 = arith.constant 1.250000e+00 : f32
      %238 = vector.broadcast %cst_64 : f32 to vector<4x8x128xf32>
      %239 = arith.subf %238, %199 : vector<4x8x128xf32>
      %240 = arith.mulf %239, %176 : vector<4x8x128xf32>
      %241 = arith.addf %237, %240 : vector<4x8x128xf32>
      %cst_65 = arith.constant 2.500000e-01 : f32
      %242 = vector.broadcast %cst_65 : f32 to vector<4x8x128xf32>
      %243 = arith.subf %199, %242 : vector<4x8x128xf32>
      %244 = arith.mulf %243, %176 : vector<4x8x128xf32>
      %cst_66 = arith.constant 1.750000e+00 : f32
      %245 = vector.broadcast %cst_66 : f32 to vector<4x8x128xf32>
      %246 = arith.subf %245, %199 : vector<4x8x128xf32>
      %247 = arith.mulf %246, %183 : vector<4x8x128xf32>
      %248 = arith.addf %244, %247 : vector<4x8x128xf32>
      %cst_67 = arith.constant 7.500000e-01 : f32
      %249 = vector.broadcast %cst_67 : f32 to vector<4x8x128xf32>
      %250 = arith.subf %199, %249 : vector<4x8x128xf32>
      %251 = arith.mulf %250, %183 : vector<4x8x128xf32>
      %cst_68 = arith.constant 2.250000e+00 : f32
      %252 = vector.broadcast %cst_68 : f32 to vector<4x8x128xf32>
      %253 = arith.subf %252, %199 : vector<4x8x128xf32>
      %254 = arith.mulf %253, %190 : vector<4x8x128xf32>
      %255 = arith.addf %251, %254 : vector<4x8x128xf32>
      %cst_69 = arith.constant 1.250000e+00 : f32
      %256 = vector.broadcast %cst_69 : f32 to vector<4x8x128xf32>
      %257 = arith.subf %199, %256 : vector<4x8x128xf32>
      %258 = arith.mulf %257, %190 : vector<4x8x128xf32>
      %cst_70 = arith.constant 2.750000e+00 : f32
      %259 = vector.broadcast %cst_70 : f32 to vector<4x8x128xf32>
      %260 = arith.subf %259, %199 : vector<4x8x128xf32>
      %261 = arith.mulf %260, %197 : vector<4x8x128xf32>
      %262 = arith.addf %258, %261 : vector<4x8x128xf32>
      %cst_71 = arith.constant 0.833333313 : f32
      %263 = vector.broadcast %cst_71 : f32 to vector<4x8x128xf32>
      %264 = arith.mulf %42, %263 : vector<4x8x128xf32>
      %cst_72 = arith.constant -1.83333337 : f32
      %265 = vector.broadcast %cst_72 : f32 to vector<4x8x128xf32>
      %266 = arith.subf %264, %265 : vector<4x8x128xf32>
      %267 = arith.mulf %266, %206 : vector<4x8x128xf32>
      %cst_73 = arith.constant -5.000000e-01 : f32
      %268 = vector.broadcast %cst_73 : f32 to vector<4x8x128xf32>
      %269 = arith.subf %268, %264 : vector<4x8x128xf32>
      %270 = arith.mulf %269, %213 : vector<4x8x128xf32>
      %271 = arith.addf %267, %270 : vector<4x8x128xf32>
      %cst_74 = arith.constant -1.500000e+00 : f32
      %272 = vector.broadcast %cst_74 : f32 to vector<4x8x128xf32>
      %273 = arith.subf %264, %272 : vector<4x8x128xf32>
      %274 = arith.mulf %273, %213 : vector<4x8x128xf32>
      %cst_75 = arith.constant -0.166666672 : f32
      %275 = vector.broadcast %cst_75 : f32 to vector<4x8x128xf32>
      %276 = arith.subf %275, %264 : vector<4x8x128xf32>
      %277 = arith.mulf %276, %220 : vector<4x8x128xf32>
      %278 = arith.addf %274, %277 : vector<4x8x128xf32>
      %cst_76 = arith.constant -1.16666663 : f32
      %279 = vector.broadcast %cst_76 : f32 to vector<4x8x128xf32>
      %280 = arith.subf %264, %279 : vector<4x8x128xf32>
      %281 = arith.mulf %280, %220 : vector<4x8x128xf32>
      %cst_77 = arith.constant 0.166666672 : f32
      %282 = vector.broadcast %cst_77 : f32 to vector<4x8x128xf32>
      %283 = arith.subf %282, %264 : vector<4x8x128xf32>
      %284 = arith.mulf %283, %227 : vector<4x8x128xf32>
      %285 = arith.addf %281, %284 : vector<4x8x128xf32>
      %cst_78 = arith.constant -0.833333313 : f32
      %286 = vector.broadcast %cst_78 : f32 to vector<4x8x128xf32>
      %287 = arith.subf %264, %286 : vector<4x8x128xf32>
      %288 = arith.mulf %287, %227 : vector<4x8x128xf32>
      %cst_79 = arith.constant 5.000000e-01 : f32
      %289 = vector.broadcast %cst_79 : f32 to vector<4x8x128xf32>
      %290 = arith.subf %289, %264 : vector<4x8x128xf32>
      %291 = arith.mulf %290, %234 : vector<4x8x128xf32>
      %292 = arith.addf %288, %291 : vector<4x8x128xf32>
      %cst_80 = arith.constant -5.000000e-01 : f32
      %293 = vector.broadcast %cst_80 : f32 to vector<4x8x128xf32>
      %294 = arith.subf %264, %293 : vector<4x8x128xf32>
      %295 = arith.mulf %294, %234 : vector<4x8x128xf32>
      %cst_81 = arith.constant 0.833333313 : f32
      %296 = vector.broadcast %cst_81 : f32 to vector<4x8x128xf32>
      %297 = arith.subf %296, %264 : vector<4x8x128xf32>
      %298 = arith.mulf %297, %241 : vector<4x8x128xf32>
      %299 = arith.addf %295, %298 : vector<4x8x128xf32>
      %cst_82 = arith.constant -0.166666672 : f32
      %300 = vector.broadcast %cst_82 : f32 to vector<4x8x128xf32>
      %301 = arith.subf %264, %300 : vector<4x8x128xf32>
      %302 = arith.mulf %301, %241 : vector<4x8x128xf32>
      %cst_83 = arith.constant 1.16666663 : f32
      %303 = vector.broadcast %cst_83 : f32 to vector<4x8x128xf32>
      %304 = arith.subf %303, %264 : vector<4x8x128xf32>
      %305 = arith.mulf %304, %248 : vector<4x8x128xf32>
      %306 = arith.addf %302, %305 : vector<4x8x128xf32>
      %cst_84 = arith.constant 0.166666672 : f32
      %307 = vector.broadcast %cst_84 : f32 to vector<4x8x128xf32>
      %308 = arith.subf %264, %307 : vector<4x8x128xf32>
      %309 = arith.mulf %308, %248 : vector<4x8x128xf32>
      %cst_85 = arith.constant 1.500000e+00 : f32
      %310 = vector.broadcast %cst_85 : f32 to vector<4x8x128xf32>
      %311 = arith.subf %310, %264 : vector<4x8x128xf32>
      %312 = arith.mulf %311, %255 : vector<4x8x128xf32>
      %313 = arith.addf %309, %312 : vector<4x8x128xf32>
      %cst_86 = arith.constant 5.000000e-01 : f32
      %314 = vector.broadcast %cst_86 : f32 to vector<4x8x128xf32>
      %315 = arith.subf %264, %314 : vector<4x8x128xf32>
      %316 = arith.mulf %315, %255 : vector<4x8x128xf32>
      %cst_87 = arith.constant 1.83333337 : f32
      %317 = vector.broadcast %cst_87 : f32 to vector<4x8x128xf32>
      %318 = arith.subf %317, %264 : vector<4x8x128xf32>
      %319 = arith.mulf %318, %262 : vector<4x8x128xf32>
      %320 = arith.addf %316, %319 : vector<4x8x128xf32>
      %321 = vector.extract_strided_slice %48 {offsets = [0, 0, 0], sizes = [1, 8, 128], strides = [1, 1, 1]} : vector<4x8x128xf32> to vector<1x8x128xf32>
      %322 = vector.shape_cast %321 : vector<1x8x128xf32> to vector<8x128xf32>
      %323 = vector.broadcast %0 : f32 to vector<8x128xf32>
      %324 = arith.mulf %323, %322 : vector<8x128xf32>
      %325 = vector.extract_strided_slice %48 {offsets = [1, 0, 0], sizes = [1, 8, 128], strides = [1, 1, 1]} : vector<4x8x128xf32> to vector<1x8x128xf32>
      %326 = vector.shape_cast %325 : vector<1x8x128xf32> to vector<8x128xf32>
      %327 = vector.broadcast %1 : f32 to vector<8x128xf32>
      %328 = arith.mulf %327, %326 : vector<8x128xf32>
      %329 = arith.addf %324, %328 : vector<8x128xf32>
      %330 = vector.extract_strided_slice %48 {offsets = [2, 0, 0], sizes = [1, 8, 128], strides = [1, 1, 1]} : vector<4x8x128xf32> to vector<1x8x128xf32>
      %331 = vector.shape_cast %330 : vector<1x8x128xf32> to vector<8x128xf32>
      %332 = vector.broadcast %2 : f32 to vector<8x128xf32>
      %333 = arith.mulf %332, %331 : vector<8x128xf32>
      %334 = arith.addf %329, %333 : vector<8x128xf32>
      %335 = vector.extract_strided_slice %48 {offsets = [3, 0, 0], sizes = [1, 8, 128], strides = [1, 1, 1]} : vector<4x8x128xf32> to vector<1x8x128xf32>
      %336 = vector.shape_cast %335 : vector<1x8x128xf32> to vector<8x128xf32>
      %337 = vector.broadcast %3 : f32 to vector<8x128xf32>
      %338 = arith.mulf %337, %336 : vector<8x128xf32>
      %339 = arith.addf %334, %338 : vector<8x128xf32>
      %340 = vector.extract_strided_slice %271 {offsets = [0, 0, 0], sizes = [1, 8, 128], strides = [1, 1, 1]} : vector<4x8x128xf32> to vector<1x8x128xf32>
      %341 = vector.shape_cast %340 : vector<1x8x128xf32> to vector<8x128xf32>
      %342 = vector.broadcast %4 : f32 to vector<8x128xf32>
      %343 = arith.mulf %342, %341 : vector<8x128xf32>
      %344 = arith.addf %339, %343 : vector<8x128xf32>
      %345 = vector.extract_strided_slice %271 {offsets = [1, 0, 0], sizes = [1, 8, 128], strides = [1, 1, 1]} : vector<4x8x128xf32> to vector<1x8x128xf32>
      %346 = vector.shape_cast %345 : vector<1x8x128xf32> to vector<8x128xf32>
      %347 = vector.broadcast %5 : f32 to vector<8x128xf32>
      %348 = arith.mulf %347, %346 : vector<8x128xf32>
      %349 = arith.addf %344, %348 : vector<8x128xf32>
      %350 = vector.extract_strided_slice %271 {offsets = [2, 0, 0], sizes = [1, 8, 128], strides = [1, 1, 1]} : vector<4x8x128xf32> to vector<1x8x128xf32>
      %351 = vector.shape_cast %350 : vector<1x8x128xf32> to vector<8x128xf32>
      %352 = vector.broadcast %6 : f32 to vector<8x128xf32>
      %353 = arith.mulf %352, %351 : vector<8x128xf32>
      %354 = arith.addf %349, %353 : vector<8x128xf32>
      %355 = vector.extract_strided_slice %271 {offsets = [3, 0, 0], sizes = [1, 8, 128], strides = [1, 1, 1]} : vector<4x8x128xf32> to vector<1x8x128xf32>
      %356 = vector.shape_cast %355 : vector<1x8x128xf32> to vector<8x128xf32>
      %357 = vector.broadcast %7 : f32 to vector<8x128xf32>
      %358 = arith.mulf %357, %356 : vector<8x128xf32>
      %359 = arith.addf %354, %358 : vector<8x128xf32>
      %360 = vector.extract_strided_slice %278 {offsets = [0, 0, 0], sizes = [1, 8, 128], strides = [1, 1, 1]} : vector<4x8x128xf32> to vector<1x8x128xf32>
      %361 = vector.shape_cast %360 : vector<1x8x128xf32> to vector<8x128xf32>
      %362 = vector.broadcast %8 : f32 to vector<8x128xf32>
      %363 = arith.mulf %362, %361 : vector<8x128xf32>
      %364 = arith.addf %359, %363 : vector<8x128xf32>
      %365 = vector.extract_strided_slice %278 {offsets = [1, 0, 0], sizes = [1, 8, 128], strides = [1, 1, 1]} : vector<4x8x128xf32> to vector<1x8x128xf32>
      %366 = vector.shape_cast %365 : vector<1x8x128xf32> to vector<8x128xf32>
      %367 = vector.broadcast %9 : f32 to vector<8x128xf32>
      %368 = arith.mulf %367, %366 : vector<8x128xf32>
      %369 = arith.addf %364, %368 : vector<8x128xf32>
      %370 = vector.extract_strided_slice %278 {offsets = [2, 0, 0], sizes = [1, 8, 128], strides = [1, 1, 1]} : vector<4x8x128xf32> to vector<1x8x128xf32>
      %371 = vector.shape_cast %370 : vector<1x8x128xf32> to vector<8x128xf32>
      %372 = vector.broadcast %10 : f32 to vector<8x128xf32>
      %373 = arith.mulf %372, %371 : vector<8x128xf32>
      %374 = arith.addf %369, %373 : vector<8x128xf32>
      %375 = vector.extract_strided_slice %278 {offsets = [3, 0, 0], sizes = [1, 8, 128], strides = [1, 1, 1]} : vector<4x8x128xf32> to vector<1x8x128xf32>
      %376 = vector.shape_cast %375 : vector<1x8x128xf32> to vector<8x128xf32>
      %377 = vector.broadcast %11 : f32 to vector<8x128xf32>
      %378 = arith.mulf %377, %376 : vector<8x128xf32>
      %379 = arith.addf %374, %378 : vector<8x128xf32>
      %380 = vector.extract_strided_slice %285 {offsets = [0, 0, 0], sizes = [1, 8, 128], strides = [1, 1, 1]} : vector<4x8x128xf32> to vector<1x8x128xf32>
      %381 = vector.shape_cast %380 : vector<1x8x128xf32> to vector<8x128xf32>
      %382 = vector.broadcast %12 : f32 to vector<8x128xf32>
      %383 = arith.mulf %382, %381 : vector<8x128xf32>
      %384 = arith.addf %379, %383 : vector<8x128xf32>
      %385 = vector.extract_strided_slice %285 {offsets = [1, 0, 0], sizes = [1, 8, 128], strides = [1, 1, 1]} : vector<4x8x128xf32> to vector<1x8x128xf32>
      %386 = vector.shape_cast %385 : vector<1x8x128xf32> to vector<8x128xf32>
      %387 = vector.broadcast %13 : f32 to vector<8x128xf32>
      %388 = arith.mulf %387, %386 : vector<8x128xf32>
      %389 = arith.addf %384, %388 : vector<8x128xf32>
      %390 = vector.extract_strided_slice %285 {offsets = [2, 0, 0], sizes = [1, 8, 128], strides = [1, 1, 1]} : vector<4x8x128xf32> to vector<1x8x128xf32>
      %391 = vector.shape_cast %390 : vector<1x8x128xf32> to vector<8x128xf32>
      %392 = vector.broadcast %14 : f32 to vector<8x128xf32>
      %393 = arith.mulf %392, %391 : vector<8x128xf32>
      %394 = arith.addf %389, %393 : vector<8x128xf32>
      %395 = vector.extract_strided_slice %285 {offsets = [3, 0, 0], sizes = [1, 8, 128], strides = [1, 1, 1]} : vector<4x8x128xf32> to vector<1x8x128xf32>
      %396 = vector.shape_cast %395 : vector<1x8x128xf32> to vector<8x128xf32>
      %397 = vector.broadcast %15 : f32 to vector<8x128xf32>
      %398 = arith.mulf %397, %396 : vector<8x128xf32>
      %399 = arith.addf %394, %398 : vector<8x128xf32>
      %400 = vector.extract_strided_slice %292 {offsets = [0, 0, 0], sizes = [1, 8, 128], strides = [1, 1, 1]} : vector<4x8x128xf32> to vector<1x8x128xf32>
      %401 = vector.shape_cast %400 : vector<1x8x128xf32> to vector<8x128xf32>
      %402 = vector.broadcast %16 : f32 to vector<8x128xf32>
      %403 = arith.mulf %402, %401 : vector<8x128xf32>
      %404 = arith.addf %399, %403 : vector<8x128xf32>
      %405 = vector.extract_strided_slice %292 {offsets = [1, 0, 0], sizes = [1, 8, 128], strides = [1, 1, 1]} : vector<4x8x128xf32> to vector<1x8x128xf32>
      %406 = vector.shape_cast %405 : vector<1x8x128xf32> to vector<8x128xf32>
      %407 = vector.broadcast %17 : f32 to vector<8x128xf32>
      %408 = arith.mulf %407, %406 : vector<8x128xf32>
      %409 = arith.addf %404, %408 : vector<8x128xf32>
      %410 = vector.extract_strided_slice %292 {offsets = [2, 0, 0], sizes = [1, 8, 128], strides = [1, 1, 1]} : vector<4x8x128xf32> to vector<1x8x128xf32>
      %411 = vector.shape_cast %410 : vector<1x8x128xf32> to vector<8x128xf32>
      %412 = vector.broadcast %18 : f32 to vector<8x128xf32>
      %413 = arith.mulf %412, %411 : vector<8x128xf32>
      %414 = arith.addf %409, %413 : vector<8x128xf32>
      %415 = vector.extract_strided_slice %292 {offsets = [3, 0, 0], sizes = [1, 8, 128], strides = [1, 1, 1]} : vector<4x8x128xf32> to vector<1x8x128xf32>
      %416 = vector.shape_cast %415 : vector<1x8x128xf32> to vector<8x128xf32>
      %417 = vector.broadcast %19 : f32 to vector<8x128xf32>
      %418 = arith.mulf %417, %416 : vector<8x128xf32>
      %419 = arith.addf %414, %418 : vector<8x128xf32>
      %420 = vector.extract_strided_slice %299 {offsets = [0, 0, 0], sizes = [1, 8, 128], strides = [1, 1, 1]} : vector<4x8x128xf32> to vector<1x8x128xf32>
      %421 = vector.shape_cast %420 : vector<1x8x128xf32> to vector<8x128xf32>
      %422 = vector.broadcast %20 : f32 to vector<8x128xf32>
      %423 = arith.mulf %422, %421 : vector<8x128xf32>
      %424 = arith.addf %419, %423 : vector<8x128xf32>
      %425 = vector.extract_strided_slice %299 {offsets = [1, 0, 0], sizes = [1, 8, 128], strides = [1, 1, 1]} : vector<4x8x128xf32> to vector<1x8x128xf32>
      %426 = vector.shape_cast %425 : vector<1x8x128xf32> to vector<8x128xf32>
      %427 = vector.broadcast %21 : f32 to vector<8x128xf32>
      %428 = arith.mulf %427, %426 : vector<8x128xf32>
      %429 = arith.addf %424, %428 : vector<8x128xf32>
      %430 = vector.extract_strided_slice %299 {offsets = [2, 0, 0], sizes = [1, 8, 128], strides = [1, 1, 1]} : vector<4x8x128xf32> to vector<1x8x128xf32>
      %431 = vector.shape_cast %430 : vector<1x8x128xf32> to vector<8x128xf32>
      %432 = vector.broadcast %22 : f32 to vector<8x128xf32>
      %433 = arith.mulf %432, %431 : vector<8x128xf32>
      %434 = arith.addf %429, %433 : vector<8x128xf32>
      %435 = vector.extract_strided_slice %299 {offsets = [3, 0, 0], sizes = [1, 8, 128], strides = [1, 1, 1]} : vector<4x8x128xf32> to vector<1x8x128xf32>
      %436 = vector.shape_cast %435 : vector<1x8x128xf32> to vector<8x128xf32>
      %437 = vector.broadcast %23 : f32 to vector<8x128xf32>
      %438 = arith.mulf %437, %436 : vector<8x128xf32>
      %439 = arith.addf %434, %438 : vector<8x128xf32>
      %440 = vector.extract_strided_slice %306 {offsets = [0, 0, 0], sizes = [1, 8, 128], strides = [1, 1, 1]} : vector<4x8x128xf32> to vector<1x8x128xf32>
      %441 = vector.shape_cast %440 : vector<1x8x128xf32> to vector<8x128xf32>
      %442 = vector.broadcast %24 : f32 to vector<8x128xf32>
      %443 = arith.mulf %442, %441 : vector<8x128xf32>
      %444 = arith.addf %439, %443 : vector<8x128xf32>
      %445 = vector.extract_strided_slice %306 {offsets = [1, 0, 0], sizes = [1, 8, 128], strides = [1, 1, 1]} : vector<4x8x128xf32> to vector<1x8x128xf32>
      %446 = vector.shape_cast %445 : vector<1x8x128xf32> to vector<8x128xf32>
      %447 = vector.broadcast %25 : f32 to vector<8x128xf32>
      %448 = arith.mulf %447, %446 : vector<8x128xf32>
      %449 = arith.addf %444, %448 : vector<8x128xf32>
      %450 = vector.extract_strided_slice %306 {offsets = [2, 0, 0], sizes = [1, 8, 128], strides = [1, 1, 1]} : vector<4x8x128xf32> to vector<1x8x128xf32>
      %451 = vector.shape_cast %450 : vector<1x8x128xf32> to vector<8x128xf32>
      %452 = vector.broadcast %26 : f32 to vector<8x128xf32>
      %453 = arith.mulf %452, %451 : vector<8x128xf32>
      %454 = arith.addf %449, %453 : vector<8x128xf32>
      %455 = vector.extract_strided_slice %306 {offsets = [3, 0, 0], sizes = [1, 8, 128], strides = [1, 1, 1]} : vector<4x8x128xf32> to vector<1x8x128xf32>
      %456 = vector.shape_cast %455 : vector<1x8x128xf32> to vector<8x128xf32>
      %457 = vector.broadcast %27 : f32 to vector<8x128xf32>
      %458 = arith.mulf %457, %456 : vector<8x128xf32>
      %459 = arith.addf %454, %458 : vector<8x128xf32>
      %460 = vector.extract_strided_slice %313 {offsets = [0, 0, 0], sizes = [1, 8, 128], strides = [1, 1, 1]} : vector<4x8x128xf32> to vector<1x8x128xf32>
      %461 = vector.shape_cast %460 : vector<1x8x128xf32> to vector<8x128xf32>
      %462 = vector.broadcast %28 : f32 to vector<8x128xf32>
      %463 = arith.mulf %462, %461 : vector<8x128xf32>
      %464 = arith.addf %459, %463 : vector<8x128xf32>
      %465 = vector.extract_strided_slice %313 {offsets = [1, 0, 0], sizes = [1, 8, 128], strides = [1, 1, 1]} : vector<4x8x128xf32> to vector<1x8x128xf32>
      %466 = vector.shape_cast %465 : vector<1x8x128xf32> to vector<8x128xf32>
      %467 = vector.broadcast %29 : f32 to vector<8x128xf32>
      %468 = arith.mulf %467, %466 : vector<8x128xf32>
      %469 = arith.addf %464, %468 : vector<8x128xf32>
      %470 = vector.extract_strided_slice %313 {offsets = [2, 0, 0], sizes = [1, 8, 128], strides = [1, 1, 1]} : vector<4x8x128xf32> to vector<1x8x128xf32>
      %471 = vector.shape_cast %470 : vector<1x8x128xf32> to vector<8x128xf32>
      %472 = vector.broadcast %30 : f32 to vector<8x128xf32>
      %473 = arith.mulf %472, %471 : vector<8x128xf32>
      %474 = arith.addf %469, %473 : vector<8x128xf32>
      %475 = vector.extract_strided_slice %313 {offsets = [3, 0, 0], sizes = [1, 8, 128], strides = [1, 1, 1]} : vector<4x8x128xf32> to vector<1x8x128xf32>
      %476 = vector.shape_cast %475 : vector<1x8x128xf32> to vector<8x128xf32>
      %477 = vector.broadcast %31 : f32 to vector<8x128xf32>
      %478 = arith.mulf %477, %476 : vector<8x128xf32>
      %479 = arith.addf %474, %478 : vector<8x128xf32>
      %480 = vector.extract_strided_slice %320 {offsets = [0, 0, 0], sizes = [1, 8, 128], strides = [1, 1, 1]} : vector<4x8x128xf32> to vector<1x8x128xf32>
      %481 = vector.shape_cast %480 : vector<1x8x128xf32> to vector<8x128xf32>
      %482 = vector.broadcast %32 : f32 to vector<8x128xf32>
      %483 = arith.mulf %482, %481 : vector<8x128xf32>
      %484 = arith.addf %479, %483 : vector<8x128xf32>
      %485 = vector.extract_strided_slice %320 {offsets = [1, 0, 0], sizes = [1, 8, 128], strides = [1, 1, 1]} : vector<4x8x128xf32> to vector<1x8x128xf32>
      %486 = vector.shape_cast %485 : vector<1x8x128xf32> to vector<8x128xf32>
      %487 = vector.broadcast %33 : f32 to vector<8x128xf32>
      %488 = arith.mulf %487, %486 : vector<8x128xf32>
      %489 = arith.addf %484, %488 : vector<8x128xf32>
      %490 = vector.extract_strided_slice %320 {offsets = [2, 0, 0], sizes = [1, 8, 128], strides = [1, 1, 1]} : vector<4x8x128xf32> to vector<1x8x128xf32>
      %491 = vector.shape_cast %490 : vector<1x8x128xf32> to vector<8x128xf32>
      %492 = vector.broadcast %34 : f32 to vector<8x128xf32>
      %493 = arith.mulf %492, %491 : vector<8x128xf32>
      %494 = arith.addf %489, %493 : vector<8x128xf32>
      %495 = vector.extract_strided_slice %320 {offsets = [3, 0, 0], sizes = [1, 8, 128], strides = [1, 1, 1]} : vector<4x8x128xf32> to vector<1x8x128xf32>
      %496 = vector.shape_cast %495 : vector<1x8x128xf32> to vector<8x128xf32>
      %497 = vector.broadcast %35 : f32 to vector<8x128xf32>
      %498 = arith.mulf %497, %496 : vector<8x128xf32>
      %499 = arith.addf %494, %498 : vector<8x128xf32>
      %500 = arith.index_cast %40 : i32 to index
      %c0_88 = arith.constant 0 : index
      %501 = vector.load %arg4[%500, %c0_88] : memref<16x128xf32, #tpu.memory_space<vmem>>, vector<8x128xf32>
      tpu.vector_store %arg4[%500, %c0_88], %499 {strides = array<i32>} : memref<16x128xf32, #tpu.memory_space<vmem>>, vector<8x128xf32>,
    }
    %c2_i32_4 = arith.constant 2 : i32
    return
  }
  func.func @transform_0(%arg0: i32) -> i32 {
    %c0_i32 = arith.constant 0 : i32
    %c0_i32_0 = arith.constant 0 : i32
    return %c0_i32 : i32
  }
  func.func @transform_1(%arg0: i32) -> i32 {
    %c0_i32 = arith.constant 0 : i32
    %c0_i32_0 = arith.constant 0 : i32
    return %c0_i32 : i32
  }
  func.func @transform_2(%arg0: i32) -> (i32, i32, i32) {
    %c0_i32 = arith.constant 0 : i32
    %c0_i32_0 = arith.constant 0 : i32
    %c0_i32_1 = arith.constant 0 : i32
    return %c0_i32, %arg0, %c0_i32_0 : i32, i32, i32
  }
  func.func @transform_3(%arg0: i32) -> (i32, i32) {
    %c0_i32 = arith.constant 0 : i32
    %c0_i32_0 = arith.constant 0 : i32
    return %arg0, %c0_i32 : i32, i32
  }
}

</mosaic_0001>

<bundles_post_ra>
// kernel: tpu_custom_call.1
= control target key start
LH: loop header
LB: loop body
LE: loop exit
PB: predicated region body
PF: predicated region fallthrough
CT: control target
= control target key end

     0   :  { %s2752_s0 = inlined_call_operand.hbm [shape: f32[4], index: 0, kind: input, shape index: {}]   ;;  %s2753_s1 = inlined_call_operand.vmem [shape: f32[32], index: 1, kind: input, shape index: {}]   ;;  %s2754_s2 = inlined_call_operand.hbm [shape: f32[4,16,128], index: 2, kind: input, shape index: {}]   ;;  %s2755_s3 = inlined_call_operand.hbm [shape: f32[16,128], index: 3, kind: output, shape index: {}]  }
   0x1   :  { %2773 = sst [smem:[#allocation40_spill]] %s2755_s3 }
   0x2   :  { %8 = vsyncpa [#allocation5], 0 }
   0x3   :  { %9 = vsyncpa [#allocation6], 0 }
   0x4   :  { %10 = vsyncpa [#allocation3], 0 }
   0x5   :  { %11 = vsyncpa [#allocation4], 0  ;;  %s26_s14 = sshll.u32 %s2753_s1, 4  ;;  %s1263_s17 = scalar_lea.hbm %s2752_s0, 16  ;;  %s27_s14 = int_to_ptr.vmem [resolvable:$true] %s26_s14 }
   0x6   :  { %p1264_p0 = scmp.ne.s32.totalorder %s2752_s0, %s1263_s17  ;;  %p1267_p1 = scmp.lt.u32.totalorder %s1263_s17, %s2752_s0 }
   0x8   :  { %p1269_p2 = pnand %p1267_p1, %p1264_p0 }
   0xa   :  { %1272 = shalt.err (!%p1269_p2)
}
   0xb   :  { %s1345_s22 = smov [#allocation2]   ;;  %s1273_s1 = scalar_lea.vmem %s27_s14, 16 }
   0xc   :  { %19 = dma.hbm_to_smem %s2752_s0, 16, %s1345_s22, [#allocation5]  }
   0xd   :  { %p1274_p3 = scmp.ne.s32.totalorder %s27_s14, %s1273_s1  ;;  %p1278_p4 = scmp.lt.s32.totalorder %s27_s14, %s27_s14 }
   0xe   :  { %p1279_p5 = scmp.lt.s32.totalorder %s1273_s1, %s1273_s1 }
  0x10   :  { %p1280_p6 = por %p1279_p5, %p1278_p4 }
  0x12   :  { %p1281_p7 = pnand %p1280_p6, %p1274_p3 }
  0x14   :  { %1284 = shalt.err (!%p1281_p7)
}
  0x15   :  { %s1346_s25 = smov [#allocation7]   ;;  %s1347_s26 = smov [#allocation8]  }
  0x16   :  { %29 = dma.vmem_to_smem %s27_s14, 16, %s1346_s25, [#allocation6]  }
  0x17   :  { %s35_s27 = sshll.u32 %s1347_s26, 4  ;;  %s1285_s30 = scalar_lea.hbm %s2754_s2, 1024  ;;  %s36_s27 = int_to_ptr.vmem [resolvable:$true] %s35_s27 }
  0x18   :  { %p1286_p8 = scmp.ne.s32.totalorder %s2754_s2, %s1285_s30  ;;  %p1289_p9 = scmp.lt.u32.totalorder %s1285_s30, %s2754_s2 }
  0x1a   :  { %p1291_p10 = pnand %p1289_p9, %p1286_p8 }
  0x1c   :  { %1294 = shalt.err (!%p1291_p10)
}
  0x1d   :  { %s1295_s7 = scalar_lea.vmem %s36_s27, 1024  ;;  %p1300_p12 = scmp.lt.s32.totalorder %s36_s27, %s36_s27 }
  0x1e   :  { %p1296_p11 = scmp.ne.s32.totalorder %s36_s27, %s1295_s7  ;;  %p1301_p13 = scmp.lt.s32.totalorder %s1295_s7, %s1295_s7 }
  0x20   :  { %p1302_p0 = por %p1301_p13, %p1300_p12 }
  0x22   :  { %p1303_p1 = pnand %p1302_p0, %p1296_p11 }
  0x24   :  { %1306 = shalt.err (!%p1303_p1)
}
  0x25   :  { %s2756_s8 = smov 128   ;;  %s2757_s9 = smov 8  }
  0x26   :  { %41 = dma.hbm_to_vmem [thread:$0]  %s2754_s2, 1024, %s36_s27, [#allocation3], %s2756_s8, %s2756_s8, %s2757_s9  }
  0x27   :  { %1333 = dma.done.wait [#allocation5], 16  }
  0x28   :  { %1334 = vsyncadd [#allocation5], 4294967280 }
  0x29   :  { %1335 = dma.done.wait [#allocation6], 16  }
  0x2a   :  { %1336 = vsyncadd [#allocation6], 4294967280 }
  0x2b   :  { %1337 = dma.done.wait [#allocation3], 1024  }
  0x2c   :  { %1338 = vsyncadd [#allocation3], 4294966272 }
  0x2d   :  { %51 = sfence }
  0x2e   :  { %s1402_s12 = sld [smem:[#allocation2]]  ;;  %s1404_s13 = sld [smem:[#allocation2 + $0x1]] }
  0x2f   :  { %s1406_s14 = sld [smem:[#allocation2 + $0x2]]  ;;  %s1408_s15 = sld [smem:[#allocation2 + $0x3]] }
  0x30   :  { %s1410_s16 = sld [smem:[#allocation7]]  ;;  %s1412_s17 = sld [smem:[#allocation7 + $0x1]] }
  0x31   :  { %s1414_s2 = sld [smem:[#allocation7 + $0x2]]  ;;  %s1416_s18 = sld [smem:[#allocation7 + $0x3]] }
  0x32   :  { %s1418_s19 = sld [smem:[#allocation7 + $0x4]]  ;;  %s1420_s20 = sld [smem:[#allocation7 + $0x5]] }
  0x33   :  { %s1422_s21 = sld [smem:[#allocation7 + $0x6]]  ;;  %s1424_s22 = sld [smem:[#allocation7 + $0x7]] }
  0x34   :  { %s1426_s23 = sld [smem:[#allocation7 + $0x8]]  ;;  %s1428_s24 = sld [smem:[#allocation7 + $0x9]] }
  0x35   :  { %s1430_s1 = sld [smem:[#allocation7 + $0xa]]  ;;  %s1432_s25 = sld [smem:[#allocation7 + $0xb]] }
  0x36   :  { %s1434_s26 = sld [smem:[#allocation7 + $0xc]]  ;;  %s1436_s27 = sld [smem:[#allocation7 + $0xd]] }
  0x37   :  { %2774 = sst [smem:[#allocation14_spill]] %s1414_s2  ;;  %s1438_s28 = sld [smem:[#allocation7 + $0xe]] }
  0x38   :  { %s1440_s29 = sld [smem:[#allocation7 + $0xf]]  ;;  %s1442_s30 = sld [smem:[#allocation7 + $0x10]] }
  0x39   :  { %s1444_s4 = sld [smem:[#allocation7 + $0x11]]  ;;  %s1446_s5 = sld [smem:[#allocation7 + $0x12]] }
  0x3a   :  { %s1448_s0 = sld [smem:[#allocation7 + $0x13]]  ;;  %s1450_s6 = sld [smem:[#allocation7 + $0x14]] }
  0x3b   :  { %2775 = sst [smem:[#allocation15_spill]] %s1430_s1  ;;  %s1452_s7 = sld [smem:[#allocation7 + $0x15]] }
  0x3c   :  { %s1454_s10 = sld [smem:[#allocation7 + $0x16]]  ;;  %s1456_s11 = sld [smem:[#allocation7 + $0x17]] }
  0x3d   :  { %s1458_s8 = sld [smem:[#allocation7 + $0x18]]  ;;  %s1460_s9 = sld [smem:[#allocation7 + $0x19]] }
  0x3e   :  { %2776 = sst [smem:[#allocation16_spill]] %s1442_s30  ;;  %s1464_s30 = sld [smem:[#allocation7 + $0x1b]] }
  0x3f   :  { %2777 = sst [smem:[#allocation17_spill]] %s1444_s4  ;;  %s1462_s3 = sld [smem:[#allocation7 + $0x1a]] }
  0x40   :  { %2778 = sst [smem:[#allocation18_spill]] %s1446_s5  ;;  %s1468_s5 = sld [smem:[#allocation7 + $0x1d]] }
  0x41   :  { %2779 = sst [smem:[#allocation19_spill]] %s1448_s0  ;;  %s1466_s4 = sld [smem:[#allocation7 + $0x1c]] }
  0x42   :  { %2780 = sst [smem:[#allocation20_spill]] %s1450_s6  ;;  %s1472_s6 = sld [smem:[#allocation7 + $0x1f]] }
  0x43   :  { %2781 = sst [smem:[#allocation21_spill]] %s1452_s7  ;;  %s1470_s0 = sld [smem:[#allocation7 + $0x1e]] }
  0x44   :  { %2783 = sst [smem:[#allocation23_spill]] %s1464_s30  ;;  %s1474_s7 = smov 0  }
  0x45   :  { %2782 = sst [smem:[#allocation22_spill]] %s1462_s3 }
  0x46 LB: > { %s2772_s3 = sshll.u32 %s1343_s7, 3  ;;  %v2759_v17 = vmov 0.0   ;;  %s2911_s2 = sld [smem:[#allocation14_spill]]  ;;  %s1343_s7 = sphi %s1474_s7, %s93_s7  }
  0x47   : > { %s1482_s30 = scalar_lea.vmem [#allocation8], %s2772_s3  ;;  %s2913_s1 = sld [smem:[#allocation15_spill]] }
  0x48   : > { %v1485_v0 = vld [vmem:[%s1482_s30] sm:$0xff]  ;;  %v1488_v1 = vld [vmem:[%s1482_s30 + $0x10] sm:$0xff]  ;;  %s2917_s3 = sld [smem:[#allocation17_spill]] }
  0x49   : > { %2784 = vst [vmem:[#allocation24_spill] sm:$0xff] %v1485_v0  ;;  %2785 = vst [vmem:[#allocation25_spill] sm:$0xff] %v1488_v1  ;;  %v1491_v2 = vld [vmem:[%s1482_s30 + $0x20] sm:$0xff]  ;;  %v1494_v3 = vld [vmem:[%s1482_s30 + $0x30] sm:$0xff]  ;;  %v1072_v4 = vmul.f32 -1.442695, %v1485_v0 }
  0x4a   : > { %2786 = vst [vmem:[#allocation26_spill] sm:$0xff] %v1491_v2  ;;  %v1073_v5 = vmul.f32 -1.442695, %v1488_v1  ;;  %v1074_v6 = vmul.f32 -1.442695, %v1491_v2  ;;  %v1822_v9 = vmul.f32 2.5, %v1485_v0 }
  0x4b   : > { %v1075_v7 = vmul.f32 -1.442695, %v1494_v3  ;;  %1243 = vpow2.f32 %v1072_v4  ;;  %vm128_vm0 = vcmp.ge.f32.partialorder %v1485_v0, -2.2  ;;  %vm132_vm1 = vcmp.lt.f32.partialorder %v1485_v0, -1.8 }
  0x4c   : > { %1245 = vpow2.f32 %v1073_v5  ;;  %vm129_vm2 = vcmp.ge.f32.partialorder %v1488_v1, -2.2  ;;  %vm133_vm3 = vcmp.lt.f32.partialorder %v1488_v1, -1.8  ;;  %vm130_vm4 = vcmp.ge.f32.partialorder %v1491_v2, -2.2  ;;  %vm1508_vm8 = vmand %vm128_vm0, %vm132_vm1 }
  0x4d   : > { %1247 = vpow2.f32 %v1074_v6  ;;  %vm134_vm5 = vcmp.lt.f32.partialorder %v1491_v2, -1.8  ;;  %vm131_vm6 = vcmp.ge.f32.partialorder %v1494_v3, -2.2  ;;  %vm135_vm7 = vcmp.lt.f32.partialorder %v1494_v3, -1.8  ;;  %vm1512_vm9 = vmand %vm129_vm2, %vm133_vm3 }
  0x4e   : > { %1249 = vpow2.f32 %v1075_v7  ;;  %vm148_vm10 = vcmp.ge.f32.partialorder %v1485_v0, -1.8  ;;  %vm152_vm11 = vcmp.lt.f32.partialorder %v1485_v0, -1.4  ;;  %vm1518_vm12 = vmand %vm130_vm4, %vm134_vm5  ;;  %vm149_vm13 = vcmp.ge.f32.partialorder %v1488_v1, -1.8 }
  0x4f   : > { %vm153_vm14 = vcmp.lt.f32.partialorder %v1488_v1, -1.4  ;;  %vm1524_vm15 = vmand %vm131_vm6, %vm135_vm7  ;;  %vm150_vm0 = vcmp.ge.f32.partialorder %v1491_v2, -1.8  ;;  %vm154_vm1 = vcmp.lt.f32.partialorder %v1491_v2, -1.4 }
  0x50   : > { %vm151_vm2 = vcmp.ge.f32.partialorder %v1494_v3, -1.8  ;;  %vm155_vm3 = vcmp.lt.f32.partialorder %v1494_v3, -1.4  ;;  %vm1532_vm4 = vmand %vm148_vm10, %vm152_vm11  ;;  %vm168_vm6 = vcmp.ge.f32.partialorder %v1485_v0, -1.4 }
  0x51   : > { %vm1536_vm5 = vmand %vm149_vm13, %vm153_vm14  ;;  %vm172_vm7 = vcmp.lt.f32.partialorder %v1485_v0, -1.0  ;;  %v1545_v18 = vsel %vm1508_vm8, 1.0, %v2759_v17  ;;  %v1550_v19 = vsel %vm1512_vm9, 1.0, %v2759_v17  ;;  %vm169_vm11 = vcmp.ge.f32.partialorder %v1488_v1, -1.4 }
  0x52   : > { %vm1552_vm10 = vmand %vm150_vm0, %vm154_vm1  ;;  %vm173_vm13 = vcmp.lt.f32.partialorder %v1488_v1, -1.0  ;;  %v1561_v23 = vsel %vm1518_vm12, 1.0, %v2759_v17  ;;  %vm170_vm9 = vcmp.ge.f32.partialorder %v1491_v2, -1.4  ;;  %vm174_vm14 = vcmp.lt.f32.partialorder %v1491_v2, -1.0 }
  0x53   : > { %vm1567_vm8 = vmand %vm151_vm2, %vm155_vm3  ;;  %v1576_v26 = vsel %vm1524_vm15, 1.0, %v2759_v17  ;;  %vm171_vm12 = vcmp.ge.f32.partialorder %v1494_v3, -1.4  ;;  %vm175_vm0 = vcmp.lt.f32.partialorder %v1494_v3, -1.0  ;;  %v1591_v29 = vsel %vm1532_vm4, 1.0, %v2759_v17 }
  0x54   : > { %vm1584_vm1 = vmand %vm168_vm6, %vm172_vm7  ;;  %vm192_vm3 = vcmp.lt.f32.partialorder %v1485_v0, -0.6  ;;  %v1604_v32 = vsel %vm1536_vm5, 1.0, %v2759_v17  ;;  %vm189_vm4 = vcmp.ge.f32.partialorder %v1488_v1, -1.0  ;;  %vm193_vm7 = vcmp.lt.f32.partialorder %v1488_v1, -0.6 }
  0x55   : > { %v1244_v12 = vpop.eup %1243  ;;  %vm1595_vm15 = vmand %vm169_vm11, %vm173_vm13  ;;  %vm190_vm13 = vcmp.ge.f32.partialorder %v1491_v2, -1.0  ;;  %vm191_vm2 = vcmp.ge.f32.partialorder %v1494_v3, -1.0  ;;  %vm194_vm5 = vcmp.lt.f32.partialorder %v1491_v2, -0.6  ;;  %v1622_v35 = vsel %vm1552_vm10, 1.0, %v2759_v17 }
  0x56   : > { %v1246_v14 = vpop.eup %1245  ;;  %v112_v22 = vadd.f32 1.0, %v1244_v12  ;;  %vm1606_vm6 = vmand %vm170_vm9, %vm174_vm14  ;;  %v1627_v36 = vsel %vm1567_vm8, 1.0, %v2759_v17  ;;  %vm195_vm9 = vcmp.lt.f32.partialorder %v1494_v3, -0.6  ;;  %vm2811_vm14 = vcmp.ge.f32.partialorder %v1485_v0, -1.0 }
  0x57   : > { %v1248_v16 = vpop.eup %1247  ;;  %v113_v25 = vadd.f32 1.0, %v1246_v14  ;;  %vm1612_vm11 = vmand %vm171_vm12, %vm175_vm0  ;;  %v1641_v38 = vsel %vm1584_vm1, 1.0, %v2759_v17  ;;  %vm212_vm0 = vcmp.lt.f32.partialorder %v1485_v0, -0.2  ;;  %v1652_v40 = vsel %vm1595_vm15, 1.0, %v2759_v17 }
  0x58   : > { %v1250_v21 = vpop.eup %1249  ;;  %v114_v28 = vadd.f32 1.0, %v1248_v16  ;;  %1251 = vrcp.f32 %v112_v22  ;;  %vm1634_vm12 = vmand %vm2811_vm14, %vm192_vm3  ;;  %vm209_vm1 = vcmp.ge.f32.partialorder %v1488_v1, -0.6  ;;  %vm210_vm14 = vcmp.ge.f32.partialorder %v1491_v2, -0.6 }
  0x59   : > { %v115_v31 = vadd.f32 1.0, %v1250_v21  ;;  %1253 = vrcp.f32 %v113_v25  ;;  %vm1643_vm10 = vmand %vm189_vm4, %vm193_vm7  ;;  %vm213_vm4 = vcmp.lt.f32.partialorder %v1488_v1, -0.2  ;;  %vm214_vm8 = vcmp.lt.f32.partialorder %v1491_v2, -0.2 }
  0x5a   : > { %1255 = vrcp.f32 %v114_v28  ;;  %vm1656_vm3 = vmand %vm190_vm13, %vm194_vm5  ;;  %v1674_v43 = vsel %vm1606_vm6, 1.0, %v2759_v17  ;;  %v1679_v44 = vsel %vm1612_vm11, 1.0, %v2759_v17  ;;  %v1684_v45 = vsel %vm1634_vm12, 1.0, %v2759_v17 }
  0x5b   : > { %1257 = vrcp.f32 %v115_v31  ;;  %vm1664_vm7 = vmand %vm191_vm2, %vm195_vm9  ;;  %vm215_vm2 = vcmp.lt.f32.partialorder %v1494_v3, -0.2  ;;  %vm2820_vm13 = vcmp.ge.f32.partialorder %v1485_v0, -0.6  ;;  %vm228_vm11 = vcmp.ge.f32.partialorder %v1485_v0, -0.2 }
  0x5c   : > { %vm1689_vm5 = vmand %vm2820_vm13, %vm212_vm0  ;;  %vm229_vm9 = vcmp.ge.f32.partialorder %v1488_v1, -0.2  ;;  %vm232_vm15 = vcmp.lt.f32.partialorder %v1485_v0, 0.2  ;;  %v1704_v48 = vsel %vm1643_vm10, 1.0, %v2759_v17  ;;  %v1709_v49 = vsel %vm1656_vm3, 1.0, %v2759_v17 }
  0x5d   : > { %vm1693_vm6 = vmand %vm209_vm1, %vm213_vm4  ;;  %vm230_vm1 = vcmp.ge.f32.partialorder %v1491_v2, -0.2  ;;  %vm233_vm4 = vcmp.lt.f32.partialorder %v1488_v1, 0.2  ;;  %v1723_v51 = vsel %vm1664_vm7, 1.0, %v2759_v17  ;;  %v1737_v53 = vsel %vm1689_vm5, 1.0, %v2759_v17 }
  0x5e   : > { %vm1713_vm0 = vmand %vm210_vm14, %vm214_vm8  ;;  %vm2827_vm10 = vcmp.ge.f32.partialorder %v1494_v3, -0.6  ;;  %vm231_vm8 = vcmp.ge.f32.partialorder %v1494_v3, -0.2  ;;  %vm234_vm14 = vcmp.lt.f32.partialorder %v1491_v2, 0.2 }
  0x5f   : > { %vm1727_vm3 = vmand %vm2827_vm10, %vm215_vm2  ;;  %vm235_vm7 = vcmp.lt.f32.partialorder %v1494_v3, 0.2  ;;  %vm248_vm10 = vcmp.ge.f32.partialorder %v1485_v0, 0.2  ;;  %v1753_v56 = vsel %vm1693_vm6, 1.0, %v2759_v17  ;;  %v1758_v57 = vsel %vm1713_vm0, 1.0, %v2759_v17 }
  0x60   : > { %vm1744_vm2 = vmand %vm228_vm11, %vm232_vm15  ;;  %vm249_vm5 = vcmp.ge.f32.partialorder %v1488_v1, 0.2  ;;  %vm252_vm11 = vcmp.lt.f32.partialorder %v1485_v0, 0.6  ;;  %vm288_vm6 = vcmp.ge.f32.partialorder %v1485_v0, 1.0  ;;  %v1786_v62 = vsel %vm1727_vm3, 1.0, %v2759_v17 }
  0x61   : > { %vm1764_vm15 = vmand %vm229_vm9, %vm233_vm4  ;;  %vm250_vm9 = vcmp.ge.f32.partialorder %v1491_v2, 0.2  ;;  %vm251_vm4 = vcmp.ge.f32.partialorder %v1494_v3, 0.2  ;;  %vm253_vm13 = vcmp.lt.f32.partialorder %v1488_v1, 0.6 }
  0x62   : > { %v1252_v55 = vpop.eup %1251  ;;  %vm1775_vm0 = vmand %vm230_vm1, %vm234_vm14  ;;  %v1799_v4 = vsel %vm1744_vm2, 1.0, %v2759_v17  ;;  %vm254_vm14 = vcmp.lt.f32.partialorder %v1491_v2, 0.6  ;;  %v1809_v7 = vsel %vm1764_vm15, 1.0, %v2759_v17  ;;  %vm255_vm3 = vcmp.lt.f32.partialorder %v1494_v3, 0.6 }
  0x63   : > { %v1254_v59 = vpop.eup %1253  ;;  %vm1792_vm1 = vmand %vm231_vm8, %vm235_vm7  ;;  %v1804_v6 = vmul.f32 %v1252_v55, %v1485_v0  ;;  %v1830_v11 = vsel %vm1775_vm0, 1.0, %v2759_v17  ;;  %vm269_vm15 = vcmp.ge.f32.partialorder %v1488_v1, 0.6  ;;  %vm270_vm0 = vcmp.ge.f32.partialorder %v1491_v2, 0.6 }
  0x64   : > { %v1256_v61 = vpop.eup %1255  ;;  %vm1816_vm8 = vmand %vm248_vm10, %vm252_vm11  ;;  %v1825_v10 = vmul.f32 %v1254_v59, %v1488_v1  ;;  %vm268_vm10 = vcmp.ge.f32.partialorder %v1485_v0, 0.6  ;;  %v1844_v13 = vsel %vm1792_vm1, 1.0, %v2759_v17  ;;  %vm292_vm1 = vcmp.lt.f32.partialorder %v1485_v0, 1.4 }
  0x65   : > { %v1258_v5 = vpop.eup %1257  ;;  %2838 = vst [vmem:[#allocation27_spill] sm:$0xff] %v1804_v6  ;;  %vm257_vm2 = vmand %vm249_vm5, %vm253_vm13  ;;  %v1839_v12 = vmul.f32 %v1256_v61, %v1491_v2  ;;  %vm271_vm13 = vcmp.ge.f32.partialorder %v1494_v3, 0.6  ;;  %v1869_v16 = vsel %vm1816_vm8, 1.0, %v2759_v17  ;;  %v1892_v24 = vmul.f32 2.5, %v1488_v1 }
  0x66   : > { %2841 = vst [vmem:[#allocation28_spill] sm:$0xff] %v1825_v10  ;;  %vm258_vm11 = vmand %vm250_vm9, %vm254_vm14  ;;  %v1853_v14 = vmul.f32 %v1258_v5, %v1494_v3  ;;  %v1872_v20 = vsel %vm257_vm2, 1.0, %v2759_v17  ;;  %vm2846_vm14 = vcmp.lt.f32.partialorder %v1485_v0, 1.0  ;;  %vm2849_vm9 = vcmp.lt.f32.partialorder %v1488_v1, 1.0 }
  0x67   : > { %2842 = vst [vmem:[#allocation29_spill] sm:$0xff] %v1839_v12  ;;  %vm1859_vm5 = vmand %vm251_vm4, %vm255_vm3  ;;  %vm295_vm3 = vcmp.lt.f32.partialorder %v1494_v3, 1.4  ;;  %v1883_v22 = vsel %vm258_vm11, 1.0, %v2759_v17  ;;  %vm309_vm2 = vcmp.ge.f32.partialorder %v1488_v1, 1.4 }
  0x68   : > { %2843 = vst [vmem:[#allocation30_spill] sm:$0xff] %v1853_v14  ;;  %vm1876_vm4 = vmand %vm268_vm10, %vm2846_vm14  ;;  %vm2850_vm10 = vcmp.lt.f32.partialorder %v1491_v2, 1.0  ;;  %vm312_vm12 = vcmp.lt.f32.partialorder %v1485_v0, 1.8  ;;  %v1901_v25 = vmul.f32 2.5, %v1491_v2  ;;  %v1904_v27 = vmul.f32 2.5, %v1494_v3 }
  0x69   : > { %vm277_vm8 = vmand %vm269_vm15, %vm2849_vm9  ;;  %v1909_v28 = vsel %vm1859_vm5, 1.0, %v2759_v17  ;;  %vm2851_vm15 = vcmp.lt.f32.partialorder %v1494_v3, 1.0  ;;  %v1922_v31 = vsel %vm1876_vm4, 1.0, %v2759_v17  ;;  %vm313_vm9 = vcmp.lt.f32.partialorder %v1488_v1, 1.8 }
  0x6a   : > { %vm278_vm14 = vmand %vm270_vm0, %vm2850_vm10  ;;  %vm314_vm10 = vcmp.lt.f32.partialorder %v1491_v2, 1.8  ;;  %v1927_v33 = vsel %vm277_vm8, 1.0, %v2759_v17  ;;  %v1120_v37 = vadd.f32 5.5, %v1822_v9  ;;  %vm2856_vm8 = vcmp.lt.f32.partialorder %v1488_v1, 1.4 }
  0x6b   : > { %vm1915_vm0 = vmand %vm271_vm13, %vm2851_vm15  ;;  %v1941_v39 = vsel %vm278_vm14, 1.0, %v2759_v17  ;;  %vm2857_vm15 = vcmp.ge.f32.partialorder %v1488_v1, 1.0  ;;  %v1121_v42 = vadd.f32 5.5, %v1892_v24  ;;  %vm2860_vm4 = vcmp.lt.f32.partialorder %v1491_v2, 1.4 }
  0x6c   : > { %vm1933_vm13 = vmand %vm288_vm6, %vm292_vm1  ;;  %vm329_vm6 = vcmp.ge.f32.partialorder %v1488_v1, 1.8  ;;  %vm330_vm1 = vcmp.ge.f32.partialorder %v1491_v2, 1.8  ;;  %vm2861_vm5 = vcmp.ge.f32.partialorder %v1491_v2, 1.0  ;;  %v1122_v47 = vadd.f32 5.5, %v1901_v25 }
  0x6d   : > { %vm1947_vm11 = vmand %vm2857_vm15, %vm2856_vm8  ;;  %v1123_v50 = vadd.f32 5.5, %v1904_v27  ;;  %v360_v52 = vsub.f32 -3.5, %v1822_v9  ;;  %vm2864_vm8 = vcmp.ge.f32.partialorder %v1494_v3, 1.0  ;;  %v361_v55 = vsub.f32 -3.5, %v1892_v24 }
  0x6e   : > { %vm1958_vm14 = vmand %vm2861_vm5, %vm2860_vm4  ;;  %vm332_vm5 = vcmp.lt.f32.partialorder %v1485_v0, 2.2  ;;  %v362_v58 = vsub.f32 -3.5, %v1901_v25  ;;  %v363_v59 = vsub.f32 -3.5, %v1904_v27  ;;  %v1981_v60 = vsel %vm1915_vm0, 1.0, %v2759_v17 }
  0x6f   : > { %vm1970_vm15 = vmand %vm2864_vm8, %vm295_vm3  ;;  %v1986_v61 = vsel %vm1933_vm13, 1.0, %v2759_v17  ;;  %vm2867_vm3 = vcmp.ge.f32.partialorder %v1485_v0, 1.4  ;;  %vm333_vm8 = vcmp.lt.f32.partialorder %v1488_v1, 2.2  ;;  %v2001_v5 = vsel %vm1947_vm11, 1.0, %v2759_v17 }
  0x70   : > { %vm1992_vm4 = vmand %vm2867_vm3, %vm312_vm12  ;;  %vm334_vm7 = vcmp.lt.f32.partialorder %v1491_v2, 2.2  ;;  %vm335_vm12 = vcmp.lt.f32.partialorder %v1494_v3, 2.2  ;;  %v356_v15 = vmul.f32 %v1120_v37, %v1545_v18  ;;  %v357_v21 = vmul.f32 %v1121_v42, %v1550_v19 }
  0x71   : > { %vm2007_vm0 = vmand %vm309_vm2, %vm313_vm9  ;;  %v2017_v30 = vsel %vm1958_vm14, 1.0, %v2759_v17  ;;  %vm2872_vm11 = vcmp.ge.f32.partialorder %v1491_v2, 1.4  ;;  %v358_v34 = vmul.f32 %v1122_v47, %v1561_v23  ;;  %v359_v41 = vmul.f32 %v1123_v50, %v1576_v26 }
  0x72   : > { %vm318_vm13 = vmand %vm2872_vm11, %vm314_vm10  ;;  %v364_v14 = vmul.f32 %v1591_v29, %v360_v52  ;;  %v2029_v18 = vsel %vm1970_vm15, 1.0, %v2759_v17  ;;  %v365_v19 = vmul.f32 %v1604_v32, %v361_v55  ;;  %v366_v37 = vmul.f32 %v1622_v35, %v362_v58 }
  0x73   : > { %v367_v42 = vmul.f32 %v1627_v36, %v363_v59  ;;  %vm2873_vm2 = vcmp.lt.f32.partialorder %v1494_v3, 1.8  ;;  %vm2874_vm9 = vcmp.ge.f32.partialorder %v1494_v3, 1.4  ;;  %v2041_v23 = vsel %vm1992_vm4, 1.0, %v2759_v17  ;;  %vm2068_vm3 = vmand %vm329_vm6, %vm333_vm8 }
  0x74   : > { %vm319_vm10 = vmand %vm2874_vm9, %vm2873_vm2  ;;  %v1124_v26 = vadd.f32 4.5, %v1822_v9  ;;  %v1125_v46 = vadd.f32 4.5, %v1892_v24  ;;  %v380_v47 = vsub.f32 -2.5, %v1822_v9  ;;  %v2049_v50 = vsel %vm2007_vm0, 1.0, %v2759_v17 }
  0x75   : > { %v2052_v52 = vsel %vm318_vm13, 1.0, %v2759_v17  ;;  %vm2876_vm14 = vcmp.ge.f32.partialorder %v1485_v0, 1.8  ;;  %v1126_v55 = vadd.f32 4.5, %v1901_v25  ;;  %v1127_v58 = vadd.f32 4.5, %v1904_v27 }
  0x76   : > { %2875 = vst [vmem:[#allocation31_spill] sm:$0xff] %v2052_v52  ;;  %vm2058_vm15 = vmand %vm2876_vm14, %vm332_vm5  ;;  %v2072_v63 = vadd.f32 %v364_v14, %v356_v15  ;;  %v381_v8 = vsub.f32 -2.5, %v1892_v24  ;;  %v382_v17 = vsub.f32 -2.5, %v1901_v25  ;;  %v383_v12 = vsub.f32 -2.5, %v1904_v27 }
  0x77   : > { %v2882_v10 = vmov 0.0   ;;  %vm2084_vm5 = vmand %vm330_vm1, %vm334_vm7  ;;  %v2088_v1 = vadd.f32 %v365_v19, %v357_v21  ;;  %v2090_v14 = vadd.f32 %v366_v37, %v358_v34  ;;  %v2092_v15 = vadd.f32 %v367_v42, %v359_v41 }
  0x78   : > { %2881 = vst [vmem:[#allocation32_spill] sm:$0xff] %v2072_v63  ;;  %v2078_v6 = vsel %vm319_vm10, 1.0, %v2882_v10  ;;  %vm2889_vm6 = vcmp.ge.f32.partialorder %v1494_v3, 1.8  ;;  %v376_v63 = vmul.f32 %v1124_v26, %v1591_v29  ;;  %v384_v2 = vmul.f32 %v1641_v38, %v380_v47 }
  0x79   : > { %2883 = vst [vmem:[#allocation33_spill] sm:$0xff] %v2078_v6  ;;  %2886 = vst [vmem:[#allocation34_spill] sm:$0xff] %v2088_v1  ;;  %v377_v6 = vmul.f32 %v1125_v46, %v1604_v32  ;;  %v1128_v0 = vadd.f32 3.5, %v1822_v9  ;;  %v2105_v21 = vsel %vm2058_vm15, 1.0, %v2882_v10  ;;  %v2110_v34 = vsel %vm2068_vm3, 1.0, %v2882_v10 }
  0x7a   : > { %2887 = vst [vmem:[#allocation35_spill] sm:$0xff] %v2090_v14  ;;  %2888 = vst [vmem:[#allocation36_spill] sm:$0xff] %v2092_v15  ;;  %v378_v41 = vmul.f32 %v1126_v55, %v1622_v35  ;;  %v379_v29 = vmul.f32 %v1127_v58, %v1627_v36  ;;  %v385_v32 = vmul.f32 %v1652_v40, %v381_v8  ;;  %v1129_v42 = vadd.f32 3.5, %v1892_v24 }
  0x7b   : > { %vm339_vm4 = vmand %vm2889_vm6, %vm335_vm12  ;;  %v386_v19 = vmul.f32 %v1674_v43, %v382_v17  ;;  %v387_v37 = vmul.f32 %v1679_v44, %v383_v12  ;;  %v2121_v26 = vsel %vm2084_vm5, 1.0, %v2882_v10  ;;  %v400_v35 = vsub.f32 -1.5, %v1822_v9 }
  0x7c   : > { %v2124_v46 = vsel %vm339_vm4, 1.0, %v2882_v10  ;;  %v401_v36 = vsub.f32 -1.5, %v1892_v24  ;;  %v2128_v47 = vadd.f32 %v384_v2, %v376_v63  ;;  %v1130_v17 = vadd.f32 3.5, %v1901_v25 }
  0x7d   : > { %v1131_v12 = vadd.f32 3.5, %v1904_v27  ;;  %v396_v54 = vmul.f32 %v1128_v0, %v1641_v38  ;;  %v402_v55 = vsub.f32 -1.5, %v1901_v25  ;;  %v403_v52 = vsub.f32 -1.5, %v1904_v27 }
  0x7e   : > { %2890 = vst [vmem:[#allocation37_spill] sm:$0xff] %v2128_v47  ;;  %v1132_v58 = vadd.f32 2.5, %v1822_v9  ;;  %v1133_v10 = vadd.f32 2.5, %v1892_v24  ;;  %v2137_v59 = vadd.f32 %v385_v32, %v377_v6  ;;  %v2139_v8 = vadd.f32 %v386_v19, %v378_v41 }
  0x7f   : > { %v2141_v2 = vadd.f32 %v387_v37, %v379_v29  ;;  %v397_v63 = vmul.f32 %v1129_v42, %v1652_v40  ;;  %v404_v15 = vmul.f32 %v1684_v45, %v400_v35  ;;  %v405_v0 = vmul.f32 %v1704_v48, %v401_v36 }
  0x80   : > { %v420_v38 = vsub.f32 -0.5, %v1822_v9  ;;  %v421_v14 = vsub.f32 -0.5, %v1892_v24  ;;  %v398_v47 = vmul.f32 %v1130_v17, %v1674_v43  ;;  %v399_v1 = vmul.f32 %v1131_v12, %v1679_v44 }
  0x81   : > { %v1134_v6 = vadd.f32 2.5, %v1901_v25  ;;  %v1135_v41 = vadd.f32 2.5, %v1904_v27  ;;  %v406_v29 = vmul.f32 %v1709_v49, %v402_v55  ;;  %v407_v40 = vmul.f32 %v1723_v51, %v403_v52 }
  0x82   : > { %v416_v32 = vmul.f32 %v1132_v58, %v1684_v45  ;;  %v417_v19 = vmul.f32 %v1133_v10, %v1704_v48  ;;  %v422_v37 = vsub.f32 -0.5, %v1901_v25  ;;  %v423_v42 = vsub.f32 -0.5, %v1904_v27 }
  0x83   : > { %v1136_v43 = vadd.f32 1.5, %v1822_v9  ;;  %v1137_v44 = vadd.f32 1.5, %v1892_v24  ;;  %v2160_v35 = vadd.f32 %v404_v15, %v396_v54  ;;  %v2162_v36 = vadd.f32 %v405_v0, %v397_v63 }
  0x84   : > { %v424_v17 = vmul.f32 %v1737_v53, %v420_v38  ;;  %v425_v12 = vmul.f32 %v1753_v56, %v421_v14  ;;  %v418_v45 = vmul.f32 %v1134_v6, %v1709_v49  ;;  %v419_v48 = vmul.f32 %v1135_v41, %v1723_v51 }
  0x85   : > { %v1138_v55 = vadd.f32 1.5, %v1901_v25  ;;  %v1139_v52 = vadd.f32 1.5, %v1904_v27  ;;  %v2170_v58 = vadd.f32 %v406_v29, %v398_v47  ;;  %v2172_v10 = vadd.f32 %v407_v40, %v399_v1 }
  0x86   : > { %v440_v15 = vsub.f32 0.5, %v1822_v9  ;;  %v441_v54 = vsub.f32 0.5, %v1892_v24  ;;  %v426_v63 = vmul.f32 %v1758_v57, %v422_v37  ;;  %v427_v14 = vmul.f32 %v1786_v62, %v423_v42 }
  0x87   : > { %v436_v49 = vmul.f32 %v1136_v43, %v1737_v53  ;;  %v437_v51 = vmul.f32 %v1137_v44, %v1753_v56  ;;  %v2180_v0 = vadd.f32 %v424_v17, %v416_v32  ;;  %v2182_v38 = vadd.f32 %v425_v12, %v417_v19 }
  0x88   : > { %v442_v47 = vsub.f32 0.5, %v1901_v25  ;;  %v443_v1 = vsub.f32 0.5, %v1904_v27  ;;  %v438_v6 = vmul.f32 %v1138_v55, %v1758_v57  ;;  %v439_v41 = vmul.f32 %v1139_v52, %v1786_v62 }
  0x89   : > { %v1140_v29 = vadd.f32 0.5, %v1822_v9  ;;  %v1141_v40 = vadd.f32 0.5, %v1892_v24  ;;  %v444_v53 = vmul.f32 %v1799_v4, %v440_v15  ;;  %v445_v56 = vmul.f32 %v1809_v7, %v441_v54 }
  0x8a   : > { %v460_v32 = vsub.f32 1.5, %v1822_v9  ;;  %v461_v19 = vsub.f32 1.5, %v1892_v24  ;;  %v2194_v37 = vadd.f32 %v426_v63, %v418_v45  ;;  %v2196_v42 = vadd.f32 %v427_v14, %v419_v48 }
  0x8b   : > { %v1142_v57 = vadd.f32 0.5, %v1901_v25  ;;  %v1143_v62 = vadd.f32 0.5, %v1904_v27  ;;  %v446_v43 = vmul.f32 %v1830_v11, %v442_v47  ;;  %v447_v44 = vmul.f32 %v1844_v13, %v443_v1 }
  0x8c   : > { %v462_v17 = vsub.f32 1.5, %v1901_v25  ;;  %v463_v12 = vsub.f32 1.5, %v1904_v27  ;;  %v456_v55 = vmul.f32 %v1140_v29, %v1799_v4  ;;  %v457_v52 = vmul.f32 %v1141_v40, %v1809_v7 }
  0x8d   : > { %v1144_v45 = vadd.f32 -0.5, %v1822_v9  ;;  %v1145_v48 = vadd.f32 -0.5, %v1892_v24  ;;  %v2208_v15 = vadd.f32 %v444_v53, %v436_v49  ;;  %v2210_v54 = vadd.f32 %v445_v56, %v437_v51 }
  0x8e   : > { %v464_v63 = vmul.f32 %v1869_v16, %v460_v32  ;;  %v465_v14 = vmul.f32 %v1872_v20, %v461_v19  ;;  %v458_v47 = vmul.f32 %v1142_v57, %v1830_v11  ;;  %v459_v1 = vmul.f32 %v1143_v62, %v1844_v13 }
  0x8f   : > { %v1146_v4 = vadd.f32 -0.5, %v1901_v25  ;;  %v1147_v7 = vadd.f32 -0.5, %v1904_v27  ;;  %v2218_v29 = vadd.f32 %v446_v43, %v438_v6  ;;  %v2220_v40 = vadd.f32 %v447_v44, %v439_v41 }
  0x90   : > { %v466_v49 = vmul.f32 %v1883_v22, %v462_v17  ;;  %v467_v51 = vmul.f32 %v1909_v28, %v463_v12  ;;  %v476_v53 = vmul.f32 %v1144_v45, %v1869_v16  ;;  %v477_v56 = vmul.f32 %v1145_v48, %v1872_v20 }
  0x91   : > { %v480_v11 = vsub.f32 2.5, %v1822_v9  ;;  %v481_v13 = vsub.f32 2.5, %v1892_v24  ;;  %v2228_v32 = vadd.f32 %v464_v63, %v456_v55  ;;  %v2230_v19 = vadd.f32 %v465_v14, %v457_v52 }
  0x92   : > { %v482_v6 = vsub.f32 2.5, %v1901_v25  ;;  %v483_v41 = vsub.f32 2.5, %v1904_v27  ;;  %v478_v57 = vmul.f32 %v1146_v4, %v1883_v22  ;;  %v479_v62 = vmul.f32 %v1147_v7, %v1909_v28 }
  0x93   : > { %v1148_v16 = vadd.f32 -1.5, %v1822_v9  ;;  %v1149_v20 = vadd.f32 -1.5, %v1892_v24  ;;  %v2238_v43 = vadd.f32 %v466_v49, %v458_v47  ;;  %v2240_v44 = vadd.f32 %v467_v51, %v459_v1 }
  0x94   : > { %v500_v17 = vsub.f32 3.5, %v1822_v9  ;;  %v501_v12 = vsub.f32 3.5, %v1892_v24  ;;  %v484_v55 = vmul.f32 %v1922_v31, %v480_v11  ;;  %v485_v52 = vmul.f32 %v1927_v33, %v481_v13 }
  0x95   : > { %2891 = vst [vmem:[#allocation38_spill] sm:$0xff] %v2238_v43  ;;  %2892 = vst [vmem:[#allocation39_spill] sm:$0xff] %v2240_v44  ;;  %v1150_v22 = vadd.f32 -1.5, %v1901_v25  ;;  %v1151_v28 = vadd.f32 -1.5, %v1904_v27  ;;  %v486_v45 = vmul.f32 %v1941_v39, %v482_v6  ;;  %v487_v48 = vmul.f32 %v1981_v60, %v483_v41 }
  0x96   : > { %v502_v63 = vsub.f32 3.5, %v1901_v25  ;;  %v503_v14 = vsub.f32 3.5, %v1904_v27  ;;  %v496_v47 = vmul.f32 %v1148_v16, %v1922_v31  ;;  %v497_v1 = vmul.f32 %v1149_v20, %v1927_v33 }
  0x97   : > { %v1152_v4 = vadd.f32 -2.5, %v1822_v9  ;;  %v1153_v7 = vadd.f32 -2.5, %v1892_v24  ;;  %v504_v49 = vmul.f32 %v1986_v61, %v500_v17  ;;  %v505_v51 = vmul.f32 %v2001_v5, %v501_v12 }
  0x98   : > { %v1154_v11 = vadd.f32 -2.5, %v1901_v25  ;;  %v1155_v13 = vadd.f32 -2.5, %v1904_v27  ;;  %v2260_v6 = vadd.f32 %v484_v55, %v476_v53  ;;  %v2262_v41 = vadd.f32 %v485_v52, %v477_v56 }
  0x99   : > { %v498_v31 = vmul.f32 %v1150_v22, %v1941_v39  ;;  %v499_v33 = vmul.f32 %v1151_v28, %v1981_v60  ;;  %v2266_v16 = vadd.f32 %v486_v45, %v478_v57  ;;  %v2268_v20 = vadd.f32 %v487_v48, %v479_v62 }
  0x9a   : > { %v506_v17 = vmul.f32 %v2017_v30, %v502_v63  ;;  %v507_v12 = vmul.f32 %v2029_v18, %v503_v14  ;;  %v516_v44 = vmul.f32 %v1152_v4, %v1986_v61  ;;  %v517_v43 = vmul.f32 %v1153_v7, %v2001_v5  ;;  %v2893_v4 = vld [vmem:[#allocation24_spill] sm:$0xff] }
  0x9b   : > { %v520_v53 = vsub.f32 4.5, %v1822_v9  ;;  %v521_v56 = vsub.f32 4.5, %v1892_v24  ;;  %v2276_v55 = vadd.f32 %v504_v49, %v496_v47  ;;  %v2278_v39 = vadd.f32 %v505_v51, %v497_v1  ;;  %v2894_v49 = vld [vmem:[#allocation25_spill] sm:$0xff] }
  0x9c   : > { %v518_v60 = vmul.f32 %v1154_v11, %v2017_v30  ;;  %v519_v57 = vmul.f32 %v1155_v13, %v2029_v18  ;;  %v522_v62 = vsub.f32 4.5, %v1901_v25  ;;  %v523_v52 = vsub.f32 4.5, %v1904_v27  ;;  %v2896_v11 = vld [vmem:[#allocation33_spill] sm:$0xff] }
  0x9d   : > { %v1156_v61 = vadd.f32 -3.5, %v1822_v9  ;;  %v1157_v5 = vadd.f32 -3.5, %v1892_v24  ;;  %v2286_v22 = vadd.f32 %v506_v17, %v498_v31  ;;  %v2288_v28 = vadd.f32 %v507_v12, %v499_v33  ;;  %v2897_v12 = vld [vmem:[#allocation26_spill] sm:$0xff] }
  0x9e   : > { %v540_v45 = vsub.f32 5.5, %v1822_v9  ;;  %v541_v48 = vsub.f32 5.5, %v1892_v24  ;;  %v524_v30 = vmul.f32 %v2041_v23, %v520_v53  ;;  %v525_v18 = vmul.f32 %v2049_v50, %v521_v56  ;;  %v2895_v9 = vld [vmem:[#allocation31_spill] sm:$0xff] }
  0x9f   : > { %v1158_v63 = vadd.f32 -3.5, %v1901_v25  ;;  %v1159_v14 = vadd.f32 -3.5, %v1904_v27  ;;  %v542_v47 = vsub.f32 5.5, %v1901_v25  ;;  %v543_v1 = vsub.f32 5.5, %v1904_v27 }
  0xa0   : > { %v2299_v7 = vmul.f32 1.25, %v2893_v4  ;;  %v2302_v51 = vmul.f32 1.25, %v2894_v49  ;;  %v526_v24 = vmul.f32 %v2895_v9, %v522_v62  ;;  %v527_v13 = vmul.f32 %v2896_v11, %v523_v52 }
  0xa1   : > { %v536_v31 = vmul.f32 %v1156_v61, %v2041_v23  ;;  %v537_v33 = vmul.f32 %v1157_v5, %v2049_v50  ;;  %v544_v17 = vmul.f32 %v2105_v21, %v540_v45  ;;  %v545_v25 = vmul.f32 %v2110_v34, %v541_v48 }
  0xa2   : > { %v2311_v27 = vmul.f32 1.25, %v2897_v12  ;;  %v2314_v53 = vmul.f32 1.25, %v1494_v3  ;;  %v2316_v56 = vadd.f32 %v524_v30, %v516_v44  ;;  %v2318_v4 = vadd.f32 %v525_v18, %v517_v43 }
  0xa3   : > { %v538_v62 = vmul.f32 %v1158_v63, %v2895_v9  ;;  %v539_v23 = vmul.f32 %v1159_v14, %v2896_v11  ;;  %v546_v50 = vmul.f32 %v2121_v26, %v542_v47  ;;  %v547_v21 = vmul.f32 %v2124_v46, %v543_v1  ;;  %v2898_v14 = vld [vmem:[#allocation32_spill] sm:$0xff]  ;;  %v2899_v1 = vld [vmem:[#allocation34_spill] sm:$0xff]  ;;  %v2900_v9 = vld [vmem:[#allocation37_spill] sm:$0xff] }
  0xa4   : > { %v1160_v34 = vadd.f32 2.75, %v2299_v7  ;;  %v1161_v52 = vadd.f32 2.75, %v2302_v51  ;;  %v2326_v61 = vadd.f32 %v526_v24, %v518_v60  ;;  %v2328_v3 = vadd.f32 %v527_v13, %v519_v57 }
  0xa5   : > { %v564_v44 = vsub.f32 -1.25, %v2299_v7  ;;  %v565_v43 = vsub.f32 -1.25, %v2302_v51  ;;  %v2332_v5 = vadd.f32 %v544_v17, %v536_v31  ;;  %v2334_v45 = vadd.f32 %v545_v25, %v537_v33  ;;  %v2901_v33 = vld [vmem:[#allocation35_spill] sm:$0xff]  ;;  %v2902_v25 = vld [vmem:[#allocation36_spill] sm:$0xff] }
  0xa6   : > { %v1162_v26 = vadd.f32 2.75, %v2311_v27  ;;  %v1163_v46 = vadd.f32 2.75, %v2314_v53  ;;  %v566_v48 = vsub.f32 -1.25, %v2311_v27  ;;  %v567_v30 = vsub.f32 -1.25, %v2314_v53 }
  0xa7   : > { %v1164_v60 = vadd.f32 2.25, %v2299_v7  ;;  %v1165_v57 = vadd.f32 2.25, %v2302_v51  ;;  %v2342_v18 = vadd.f32 %v546_v50, %v538_v62  ;;  %v2344_v63 = vadd.f32 %v547_v21, %v539_v23 }
  0xa8   : > { %v560_v47 = vmul.f32 %v1160_v34, %v2898_v14  ;;  %v561_v49 = vmul.f32 %v1161_v52, %v2899_v1  ;;  %v568_v24 = vmul.f32 %v564_v44, %v2900_v9  ;;  %v569_v11 = vmul.f32 %v565_v43, %v2137_v59 }
  0xa9   : > { %v1166_v13 = vadd.f32 2.25, %v2311_v27  ;;  %v1167_v31 = vadd.f32 2.25, %v2314_v53  ;;  %v562_v17 = vmul.f32 %v1162_v26, %v2901_v33  ;;  %v563_v12 = vmul.f32 %v1163_v46, %v2902_v25 }
  0xaa   : > { %v584_v62 = vsub.f32 -0.75, %v2299_v7  ;;  %v585_v23 = vsub.f32 -0.75, %v2302_v51  ;;  %v570_v50 = vmul.f32 %v566_v48, %v2139_v8  ;;  %v571_v21 = vmul.f32 %v567_v30, %v2141_v2 }
  0xab   : > { %v580_v34 = vmul.f32 %v1164_v60, %v2900_v9  ;;  %v581_v52 = vmul.f32 %v1165_v57, %v2137_v59  ;;  %v586_v44 = vsub.f32 -0.75, %v2311_v27  ;;  %v587_v43 = vsub.f32 -0.75, %v2314_v53 }
  0xac   : > { %v1168_v26 = vadd.f32 1.75, %v2299_v7  ;;  %v1169_v46 = vadd.f32 1.75, %v2302_v51  ;;  %v2364_v14 = vadd.f32 %v568_v24, %v560_v47  ;;  %v2366_v1 = vadd.f32 %v569_v11, %v561_v49 }
  0xad   : > { %v582_v48 = vmul.f32 %v1166_v13, %v2139_v8  ;;  %v583_v30 = vmul.f32 %v1167_v31, %v2141_v2  ;;  %v588_v60 = vmul.f32 %v584_v62, %v2160_v35  ;;  %v589_v59 = vmul.f32 %v585_v23, %v2162_v36 }
  0xae   : > { %v1170_v57 = vadd.f32 1.75, %v2311_v27  ;;  %v1171_v9 = vadd.f32 1.75, %v2314_v53  ;;  %v2374_v33 = vadd.f32 %v570_v50, %v562_v17  ;;  %v2376_v25 = vadd.f32 %v571_v21, %v563_v12 }
  0xaf   : > { %v604_v47 = vsub.f32 -0.25, %v2299_v7  ;;  %v605_v49 = vsub.f32 -0.25, %v2302_v51  ;;  %v590_v8 = vmul.f32 %v586_v44, %v2170_v58  ;;  %v591_v2 = vmul.f32 %v587_v43, %v2172_v10 }
  0xb0   : > { %v600_v24 = vmul.f32 %v1168_v26, %v2160_v35  ;;  %v601_v11 = vmul.f32 %v1169_v46, %v2162_v36  ;;  %v606_v13 = vsub.f32 -0.25, %v2311_v27  ;;  %v607_v31 = vsub.f32 -0.25, %v2314_v53 }
  0xb1   : > { %v1172_v17 = vadd.f32 1.25, %v2299_v7  ;;  %v1173_v12 = vadd.f32 1.25, %v2302_v51  ;;  %v2388_v62 = vadd.f32 %v588_v60, %v580_v34  ;;  %v2390_v23 = vadd.f32 %v589_v59, %v581_v52 }
  0xb2   : > { %v602_v50 = vmul.f32 %v1170_v57, %v2170_v58  ;;  %v603_v21 = vmul.f32 %v1171_v9, %v2172_v10  ;;  %v608_v35 = vmul.f32 %v604_v47, %v2180_v0  ;;  %v609_v36 = vmul.f32 %v605_v49, %v2182_v38 }
  0xb3   : > { %v1174_v44 = vadd.f32 1.25, %v2311_v27  ;;  %v1175_v43 = vadd.f32 1.25, %v2314_v53  ;;  %v2398_v26 = vadd.f32 %v590_v8, %v582_v48  ;;  %v2400_v46 = vadd.f32 %v591_v2, %v583_v30 }
  0xb4   : > { %v624_v34 = vsub.f32 0.25, %v2299_v7  ;;  %v625_v52 = vsub.f32 0.25, %v2302_v51  ;;  %v610_v58 = vmul.f32 %v606_v13, %v2194_v37  ;;  %v611_v10 = vmul.f32 %v607_v31, %v2196_v42 }
  0xb5   : > { %v620_v60 = vmul.f32 %v1172_v17, %v2180_v0  ;;  %v621_v59 = vmul.f32 %v1173_v12, %v2182_v38  ;;  %v626_v57 = vsub.f32 0.25, %v2311_v27  ;;  %v627_v9 = vsub.f32 0.25, %v2314_v53 }
  0xb6   : > { %v1176_v48 = vadd.f32 0.75, %v2299_v7  ;;  %v1177_v30 = vadd.f32 0.75, %v2302_v51  ;;  %v2412_v47 = vadd.f32 %v608_v35, %v600_v24  ;;  %v2414_v49 = vadd.f32 %v609_v36, %v601_v11 }
  0xb7   : > { %v622_v8 = vmul.f32 %v1174_v44, %v2194_v37  ;;  %v623_v2 = vmul.f32 %v1175_v43, %v2196_v42  ;;  %v628_v0 = vmul.f32 %v624_v34, %v2208_v15  ;;  %v629_v38 = vmul.f32 %v625_v52, %v2210_v54 }
  0xb8   : > { %v644_v13 = vsub.f32 0.75, %v2299_v7  ;;  %v645_v31 = vsub.f32 0.75, %v2302_v51  ;;  %v2422_v17 = vadd.f32 %v610_v58, %v602_v50  ;;  %v2424_v12 = vadd.f32 %v611_v10, %v603_v21 }
  0xb9   : > { %v1178_v24 = vadd.f32 0.75, %v2311_v27  ;;  %v1179_v11 = vadd.f32 0.75, %v2314_v53  ;;  %v630_v37 = vmul.f32 %v626_v57, %v2218_v29  ;;  %v631_v42 = vmul.f32 %v627_v9, %v2220_v40 }
  0xba   : > { %v640_v35 = vmul.f32 %v1176_v48, %v2208_v15  ;;  %v641_v36 = vmul.f32 %v1177_v30, %v2210_v54  ;;  %v646_v44 = vsub.f32 0.75, %v2311_v27  ;;  %v647_v43 = vsub.f32 0.75, %v2314_v53 }
  0xbb   : > { %v1180_v50 = vadd.f32 0.25, %v2299_v7  ;;  %v1181_v21 = vadd.f32 0.25, %v2302_v51  ;;  %v2436_v34 = vadd.f32 %v628_v0, %v620_v60  ;;  %v2438_v52 = vadd.f32 %v629_v38, %v621_v59  ;;  %v2903_v0 = vld [vmem:[#allocation38_spill] sm:$0xff] }
  0xbc   : > { %v648_v58 = vmul.f32 %v644_v13, %v2228_v32  ;;  %v649_v10 = vmul.f32 %v645_v31, %v2230_v19  ;;  %v642_v15 = vmul.f32 %v1178_v24, %v2218_v29  ;;  %v643_v54 = vmul.f32 %v1179_v11, %v2220_v40  ;;  %v2904_v13 = vld [vmem:[#allocation39_spill] sm:$0xff] }
  0xbd   : > { %v1182_v57 = vadd.f32 0.25, %v2311_v27  ;;  %v664_v9 = vsub.f32 1.25, %v2299_v7  ;;  %v2446_v48 = vadd.f32 %v630_v37, %v622_v8  ;;  %v2448_v30 = vadd.f32 %v631_v42, %v623_v2 }
  0xbe   : > { %v1183_v60 = vadd.f32 0.25, %v2314_v53  ;;  %v665_v59 = vsub.f32 1.25, %v2302_v51  ;;  %v650_v38 = vmul.f32 %v646_v44, %v2903_v0  ;;  %v651_v31 = vmul.f32 %v647_v43, %v2904_v13 }
  0xbf   : > { %v660_v29 = vmul.f32 %v1180_v50, %v2228_v32  ;;  %v661_v40 = vmul.f32 %v1181_v21, %v2230_v19  ;;  %v2456_v24 = vadd.f32 %v648_v58, %v640_v35  ;;  %v2458_v11 = vadd.f32 %v649_v10, %v641_v36 }
  0xc0   : > { %v666_v8 = vsub.f32 1.25, %v2311_v27  ;;  %v667_v2 = vsub.f32 1.25, %v2314_v53  ;;  %v662_v37 = vmul.f32 %v1182_v57, %v2903_v0  ;;  %v668_v42 = vmul.f32 %v664_v9, %v2260_v6 }
  0xc1   : > { %v1184_v44 = vadd.f32 -0.25, %v2299_v7  ;;  %v1185_v43 = vadd.f32 -0.25, %v2302_v51  ;;  %v663_v32 = vmul.f32 %v1183_v60, %v2904_v13  ;;  %v669_v19 = vmul.f32 %v665_v59, %v2262_v41 }
  0xc2   : > { %v1186_v35 = vadd.f32 -0.25, %v2311_v27  ;;  %v1187_v36 = vadd.f32 -0.25, %v2314_v53  ;;  %v2470_v50 = vadd.f32 %v650_v38, %v642_v15  ;;  %v2472_v21 = vadd.f32 %v651_v31, %v643_v54 }
  0xc3   : > { %v684_v58 = vsub.f32 1.75, %v2299_v7  ;;  %v685_v10 = vsub.f32 1.75, %v2302_v51  ;;  %v670_v57 = vmul.f32 %v666_v8, %v2266_v16  ;;  %v671_v9 = vmul.f32 %v667_v2, %v2268_v20 }
  0xc4   : > { %2905 = vst [vmem:[#allocation24_spill] sm:$0xff] %v2470_v50  ;;  %2906 = vst [vmem:[#allocation25_spill] sm:$0xff] %v2472_v21  ;;  %v686_v60 = vsub.f32 1.75, %v2311_v27  ;;  %v687_v59 = vsub.f32 1.75, %v2314_v53  ;;  %v2480_v0 = vadd.f32 %v668_v42, %v660_v29  ;;  %v680_v13 = vmul.f32 %v1184_v44, %v2260_v6 }
  0xc5   : > { %v681_v15 = vmul.f32 %v1185_v43, %v2262_v41  ;;  %v1188_v54 = vadd.f32 -0.75, %v2299_v7  ;;  %v2485_v38 = vadd.f32 %v669_v19, %v661_v40  ;;  %v682_v31 = vmul.f32 %v1186_v35, %v2266_v16 }
  0xc6   : > { %v683_v8 = vmul.f32 %v1187_v36, %v2268_v20  ;;  %v1189_v2 = vadd.f32 -0.75, %v2302_v51  ;;  %v688_v21 = vmul.f32 %v684_v58, %v2276_v55  ;;  %v689_v50 = vmul.f32 %v685_v10, %v2278_v39 }
  0xc7   : > { %v1190_v29 = vadd.f32 -0.75, %v2311_v27  ;;  %v1191_v6 = vadd.f32 -0.75, %v2314_v53  ;;  %v690_v41 = vmul.f32 %v686_v60, %v2286_v22  ;;  %v691_v42 = vmul.f32 %v687_v59, %v2288_v28 }
  0xc8   : > { %v704_v40 = vsub.f32 2.25, %v2299_v7  ;;  %v705_v16 = vsub.f32 2.25, %v2302_v51  ;;  %v2498_v44 = vadd.f32 %v670_v57, %v662_v37  ;;  %v2500_v20 = vadd.f32 %v671_v9, %v663_v32 }
  0xc9   : > { %v700_v43 = vmul.f32 %v1188_v54, %v2276_v55  ;;  %v706_v19 = vsub.f32 2.25, %v2311_v27  ;;  %v701_v35 = vmul.f32 %v1189_v2, %v2278_v39  ;;  %v707_v36 = vsub.f32 2.25, %v2314_v53 }
  0xca   : > { %v1192_v58 = vadd.f32 -1.25, %v2299_v7  ;;  %v1193_v10 = vadd.f32 -1.25, %v2302_v51  ;;  %v2508_v60 = vadd.f32 %v688_v21, %v680_v13  ;;  %v2510_v37 = vadd.f32 %v689_v50, %v681_v15  ;;  %v1259_v13 = vld [vmem:[%s1482_s30] sm:$0xff] }
  0xcb   : > { %v702_v32 = vmul.f32 %v1190_v29, %v2286_v22  ;;  %v703_v55 = vmul.f32 %v1191_v6, %v2288_v28  ;;  %v2514_v57 = vadd.f32 %v690_v41, %v682_v31  ;;  %v2516_v9 = vadd.f32 %v691_v42, %v683_v8  ;;  %v1260_v8 = vld [vmem:[%s1482_s30 + $0x10] sm:$0xff] }
  0xcc   : > { %v708_v39 = vmul.f32 %v704_v40, %v2316_v56  ;;  %v709_v59 = vmul.f32 %v705_v16, %v2318_v4  ;;  %v710_v54 = vmul.f32 %v706_v19, %v2326_v61  ;;  %v1194_v21 = vadd.f32 -1.25, %v2311_v27 }
  0xcd   : > { %v1195_v50 = vadd.f32 -1.25, %v2314_v53  ;;  %v2524_v22 = vmul.f32 0.8333333, %v1259_v13  ;;  %v711_v28 = vmul.f32 %v707_v36, %v2328_v3  ;;  %v720_v15 = vmul.f32 %v1192_v58, %v2316_v56  ;;  %v1261_v56 = vld [vmem:[%s1482_s30 + $0x20] sm:$0xff] }
  0xce   : > { %v721_v31 = vmul.f32 %v1193_v10, %v2318_v4  ;;  %v2530_v2 = vmul.f32 0.8333333, %v1260_v8  ;;  %v724_v29 = vsub.f32 2.75, %v2299_v7  ;;  %v725_v6 = vsub.f32 2.75, %v2302_v51  ;;  %v1262_v4 = vld [vmem:[%s1482_s30 + $0x30] sm:$0xff]  ;;  %s2916_s30 = sld [smem:[#allocation16_spill]] }
  0xcf   : > { %v726_v41 = vsub.f32 2.75, %v2311_v27  ;;  %v727_v42 = vsub.f32 2.75, %v2314_v53  ;;  %v2536_v40 = vadd.f32 %v708_v39, %v700_v43  ;;  %v2538_v16 = vadd.f32 %v709_v59, %v701_v35 }
  0xd0   : > { %v2541_v19 = vmul.f32 0.8333333, %v1261_v56  ;;  %v2544_v36 = vmul.f32 0.8333333, %v1262_v4  ;;  %v722_v7 = vmul.f32 %v1194_v21, %v2326_v61  ;;  %v723_v58 = vmul.f32 %v1195_v50, %v2328_v3 }
  0xd1   : > { %2907 = vst [vmem:[#allocation31_spill] sm:$0xff] %v2538_v16  ;;  %v1196_v51 = vadd.f32 1.8333334, %v2524_v22  ;;  %v748_v27 = vsub.f32 -0.5, %v2524_v22  ;;  %v1197_v53 = vadd.f32 1.8333334, %v2530_v2  ;;  %v900_v35 = vstv %s1402_s12 }
  0xd2   : > { %v749_v43 = vsub.f32 -0.5, %v2530_v2  ;;  %v902_v10 = vstv %s1404_s13  ;;  %v728_v39 = vmul.f32 %v724_v29, %v2332_v5  ;;  %v729_v59 = vmul.f32 %v725_v6, %v2334_v45  ;;  %v2908_v16 = vld [vmem:[#allocation27_spill] sm:$0xff]  ;;  %v2909_v29 = vld [vmem:[#allocation28_spill] sm:$0xff] }
  0xd3   : > { %v730_v13 = vmul.f32 %v726_v41, %v2342_v18  ;;  %v731_v61 = vmul.f32 %v727_v42, %v2344_v63  ;;  %v2558_v21 = vadd.f32 %v710_v54, %v702_v32  ;;  %v1198_v3 = vadd.f32 1.8333334, %v2541_v19 }
  0xd4   : > { %v1199_v50 = vadd.f32 1.8333334, %v2544_v36  ;;  %v750_v8 = vsub.f32 -0.5, %v2541_v19  ;;  %v744_v56 = vmul.f32 %v1196_v51, %v2364_v14  ;;  %v752_v4 = vmul.f32 %v748_v27, %v2388_v62 }
  0xd5   : > { %v901_v5 = vmul.f32 %v900_v35, %v2908_v16  ;;  %v903_v45 = vmul.f32 %v902_v10, %v2909_v29  ;;  %v2567_v6 = vadd.f32 %v711_v28, %v703_v55  ;;  %v745_v18 = vmul.f32 %v1197_v53, %v2366_v1 }
  0xd6   : > { %v751_v63 = vsub.f32 -0.5, %v2544_v36  ;;  %v753_v32 = vmul.f32 %v749_v43, %v2390_v23  ;;  %v2572_v54 = vadd.f32 %v728_v39, %v720_v15  ;;  %v2574_v41 = vadd.f32 %v729_v59, %v721_v31 }
  0xd7   : > { %v2576_v14 = vadd.f32 %v730_v13, %v722_v7  ;;  %v2578_v42 = vadd.f32 %v731_v61, %v723_v58  ;;  %v746_v55 = vmul.f32 %v1198_v3, %v2374_v33  ;;  %v747_v28 = vmul.f32 %v1199_v50, %v2376_v25  ;;  %v2910_v25 = vld [vmem:[#allocation29_spill] sm:$0xff]  ;;  %v2912_v3 = vld [vmem:[#allocation30_spill] sm:$0xff] }
  0xd8   : > { %v754_v1 = vmul.f32 %v750_v8, %v2398_v26  ;;  %v1200_v16 = vadd.f32 1.5, %v2524_v22  ;;  %v756_v51 = vadd.f32 %v752_v4, %v744_v56  ;;  %v1201_v15 = vadd.f32 1.5, %v2530_v2 }
  0xd9   : > { %v768_v31 = vsub.f32 -0.16666667, %v2524_v22  ;;  %v904_v27 = vadd.f32 %v903_v45, %v901_v5  ;;  %v755_v7 = vmul.f32 %v751_v63, %v2400_v46  ;;  %v757_v58 = vadd.f32 %v753_v32, %v745_v18 }
  0xda   : > { %v1202_v53 = vadd.f32 1.5, %v2541_v19  ;;  %v905_v43 = vstv %s1406_s14  ;;  %v769_v33 = vsub.f32 -0.16666667, %v2530_v2  ;;  %v908_v10 = vstv %s1408_s15 }
  0xdb   : > { %v906_v35 = vmul.f32 %v905_v43, %v2910_v25  ;;  %v911_v39 = vstv %s1410_s16  ;;  %v758_v59 = vadd.f32 %v754_v1, %v746_v55  ;;  %v764_v13 = vmul.f32 %v1200_v16, %v2388_v62 }
  0xdc   : > { %v770_v61 = vsub.f32 -0.16666667, %v2541_v19  ;;  %v909_v50 = vmul.f32 %v908_v10, %v2912_v3  ;;  %v772_v8 = vmul.f32 %v768_v31, %v2412_v47  ;;  %v912_v4 = vmul.f32 %v911_v39, %v756_v51 }
  0xdd   : > { %v907_v56 = vadd.f32 %v906_v35, %v904_v27  ;;  %v914_v5 = vstv %s1412_s17  ;;  %v759_v29 = vadd.f32 %v755_v7, %v747_v28  ;;  %v1203_v45 = vadd.f32 1.5, %v2544_v36 }
  0xde   : > { %v765_v18 = vmul.f32 %v1201_v15, %v2390_v23  ;;  %v771_v63 = vsub.f32 -0.16666667, %v2544_v36  ;;  %v773_v62 = vmul.f32 %v769_v33, %v2414_v49  ;;  %v915_v55 = vmul.f32 %v914_v5, %v757_v58 }
  0xdf   : > { %v910_v32 = vadd.f32 %v909_v50, %v907_v56  ;;  %v917_v1 = vstv %s2911_s2  ;;  %v766_v16 = vmul.f32 %v1202_v53, %v2398_v26  ;;  %v774_v31 = vmul.f32 %v770_v61, %v2422_v17  ;;  %s2919_s2 = sld [smem:[#allocation19_spill]] }
  0xe0   : > { %v1204_v51 = vadd.f32 1.1666666, %v2524_v22  ;;  %v920_v27 = vstv %s1416_s18  ;;  %v776_v28 = vadd.f32 %v772_v8, %v764_v13  ;;  %v788_v7 = vsub.f32 0.16666667, %v2524_v22 }
  0xe1   : > { %v913_v23 = vadd.f32 %v912_v4, %v910_v32  ;;  %v918_v15 = vmul.f32 %v917_v1, %v758_v59  ;;  %v767_v43 = vmul.f32 %v1203_v45, %v2400_v46  ;;  %v775_v33 = vmul.f32 %v771_v63, %v2424_v12 }
  0xe2   : > { %v1205_v58 = vadd.f32 1.1666666, %v2530_v2  ;;  %v923_v25 = vstv %s1418_s19  ;;  %v777_v26 = vadd.f32 %v773_v62, %v765_v18  ;;  %v789_v53 = vsub.f32 0.16666667, %v2530_v2 }
  0xe3   : > { %v916_v35 = vadd.f32 %v915_v55, %v913_v23  ;;  %v921_v10 = vmul.f32 %v920_v27, %v759_v29  ;;  %v1206_v39 = vadd.f32 1.1666666, %v2541_v19  ;;  %v784_v13 = vmul.f32 %v1204_v51, %v2412_v47 }
  0xe4   : > { %v790_v61 = vsub.f32 0.16666667, %v2541_v19  ;;  %v926_v59 = vstv %s1420_s20  ;;  %v778_v46 = vadd.f32 %v774_v31, %v766_v16  ;;  %v792_v3 = vmul.f32 %v788_v7, %v2436_v34 }
  0xe5   : > { %v919_v50 = vadd.f32 %v918_v15, %v916_v35  ;;  %v924_v8 = vmul.f32 %v923_v25, %v776_v28  ;;  %v1207_v56 = vadd.f32 1.1666666, %v2544_v36  ;;  %v785_v4 = vmul.f32 %v1205_v58, %v2414_v49 }
  0xe6   : > { %v791_v5 = vsub.f32 0.16666667, %v2544_v36  ;;  %v929_v29 = vstv %s1422_s21  ;;  %v779_v45 = vadd.f32 %v775_v33, %v767_v43  ;;  %v793_v47 = vmul.f32 %v789_v53, %v2438_v52 }
  0xe7   : > { %v922_v18 = vadd.f32 %v921_v10, %v919_v50  ;;  %v927_v63 = vmul.f32 %v926_v59, %v777_v26  ;;  %v786_v62 = vmul.f32 %v1206_v39, %v2422_v17  ;;  %v794_v32 = vmul.f32 %v790_v61, %v2446_v48 }
  0xe8   : > { %v1208_v55 = vadd.f32 0.8333333, %v2524_v22  ;;  %v932_v1 = vstv %s1424_s22  ;;  %v796_v16 = vadd.f32 %v792_v3, %v784_v13  ;;  %v808_v49 = vsub.f32 0.5, %v2524_v22 }
  0xe9   : > { %v925_v31 = vadd.f32 %v924_v8, %v922_v18  ;;  %v930_v51 = vmul.f32 %v929_v29, %v778_v46  ;;  %v787_v27 = vmul.f32 %v1207_v56, %v2424_v12  ;;  %v795_v28 = vmul.f32 %v791_v5, %v2448_v30 }
  0xea   : > { %v1209_v7 = vadd.f32 0.8333333, %v2530_v2  ;;  %v935_v23 = vstv %s1426_s23  ;;  %v797_v17 = vadd.f32 %v793_v47, %v785_v4  ;;  %v809_v15 = vsub.f32 0.5, %v2530_v2  ;;  %v2914_v4 = vld [vmem:[#allocation24_spill] sm:$0xff] }
  0xeb   : > { %v928_v43 = vadd.f32 %v927_v63, %v925_v31  ;;  %v933_v33 = vmul.f32 %v932_v1, %v779_v45  ;;  %v1210_v58 = vadd.f32 0.8333333, %v2541_v19  ;;  %v804_v25 = vmul.f32 %v1208_v55, %v2436_v34 }
  0xec   : > { %v810_v26 = vsub.f32 0.5, %v2541_v19  ;;  %v938_v53 = vstv %s1428_s24  ;;  %v798_v12 = vadd.f32 %v794_v32, %v786_v62  ;;  %v812_v35 = vmul.f32 %v808_v49, %v2456_v24  ;;  %v2915_v32 = vld [vmem:[#allocation25_spill] sm:$0xff] }
  0xed   : > { %v931_v10 = vadd.f32 %v930_v51, %v928_v43  ;;  %v936_v39 = vmul.f32 %v935_v23, %v796_v16  ;;  %v1211_v13 = vadd.f32 0.8333333, %v2544_v36  ;;  %v805_v61 = vmul.f32 %v1209_v7, %v2438_v52 }
  0xee   : > { %v811_v59 = vsub.f32 0.5, %v2544_v36  ;;  %v941_v46 = vstv %s2913_s1  ;;  %v799_v3 = vadd.f32 %v795_v28, %v787_v27  ;;  %v813_v34 = vmul.f32 %v809_v15, %v2458_v11  ;;  %s2918_s1 = sld [smem:[#allocation18_spill]] }
  0xef   : > { %v934_v50 = vadd.f32 %v933_v33, %v931_v10  ;;  %v939_v8 = vmul.f32 %v938_v53, %v797_v17  ;;  %v806_v56 = vmul.f32 %v1210_v58, %v2446_v48  ;;  %v814_v5 = vmul.f32 %v810_v26, %v2914_v4 }
  0xf0   : > { %v1212_v29 = vadd.f32 0.5, %v2524_v22  ;;  %v944_v45 = vstv %s1432_s25  ;;  %v816_v47 = vadd.f32 %v812_v35, %v804_v25  ;;  %v828_v52 = vsub.f32 0.8333333, %v2524_v22 }
  0xf1   : > { %v937_v18 = vadd.f32 %v936_v39, %v934_v50  ;;  %v942_v63 = vmul.f32 %v941_v46, %v798_v12  ;;  %v807_v62 = vmul.f32 %v1211_v13, %v2448_v30  ;;  %v815_v55 = vmul.f32 %v811_v59, %v2915_v32 }
  0xf2   : > { %v1213_v1 = vadd.f32 0.5, %v2530_v2  ;;  %v947_v16 = vstv %s1434_s26  ;;  %v817_v48 = vadd.f32 %v813_v34, %v805_v61  ;;  %v829_v49 = vsub.f32 0.8333333, %v2530_v2 }
  0xf3   : > { %v940_v31 = vadd.f32 %v939_v8, %v937_v18  ;;  %v945_v51 = vmul.f32 %v944_v45, %v799_v3  ;;  %v1214_v27 = vadd.f32 0.5, %v2541_v19  ;;  %v824_v28 = vmul.f32 %v1212_v29, %v2456_v24 }
  0xf4   : > { %v830_v7 = vsub.f32 0.8333333, %v2541_v19  ;;  %v950_v23 = vstv %s1436_s27  ;;  %v818_v30 = vadd.f32 %v814_v5, %v806_v56  ;;  %v832_v17 = vmul.f32 %v828_v52, %v2480_v0 }
  0xf5   : > { %v943_v15 = vadd.f32 %v942_v63, %v940_v31  ;;  %v948_v43 = vmul.f32 %v947_v16, %v816_v47  ;;  %v1215_v33 = vadd.f32 0.5, %v2544_v36  ;;  %v825_v58 = vmul.f32 %v1213_v1, %v2458_v11 }
  0xf6   : > { %v831_v25 = vsub.f32 0.8333333, %v2544_v36  ;;  %v953_v26 = vstv %s1438_s28  ;;  %v819_v53 = vadd.f32 %v815_v55, %v807_v62  ;;  %v833_v24 = vmul.f32 %v829_v49, %v2485_v38 }
  0xf7   : > { %v946_v12 = vadd.f32 %v945_v51, %v943_v15  ;;  %v951_v35 = vmul.f32 %v950_v23, %v817_v48  ;;  %v826_v10 = vmul.f32 %v1214_v27, %v2914_v4  ;;  %v834_v39 = vmul.f32 %v830_v7, %v2498_v44 }
  0xf8   : > { %v1216_v13 = vadd.f32 0.16666667, %v2524_v22  ;;  %v956_v61 = vstv %s1440_s29  ;;  %v836_v59 = vadd.f32 %v832_v17, %v824_v28  ;;  %v848_v11 = vsub.f32 1.1666666, %v2524_v22 }
  0xf9   : > { %v949_v46 = vadd.f32 %v948_v43, %v946_v12  ;;  %v954_v3 = vmul.f32 %v953_v26, %v818_v30  ;;  %v827_v34 = vmul.f32 %v1215_v33, %v2915_v32  ;;  %v835_v50 = vmul.f32 %v831_v25, %v2500_v20 }
  0xfa   : > { %v1217_v8 = vadd.f32 0.16666667, %v2530_v2  ;;  %v959_v56 = vstv %s2916_s30  ;;  %v837_v4 = vadd.f32 %v833_v24, %v825_v58  ;;  %v849_v5 = vsub.f32 1.1666666, %v2530_v2  ;;  %s2920_s30 = sld [smem:[#allocation20_spill]] }
  0xfb   : > { %v952_v29 = vadd.f32 %v951_v35, %v949_v46  ;;  %v957_v45 = vmul.f32 %v956_v61, %v819_v53  ;;  %v1218_v47 = vadd.f32 0.16666667, %v2541_v19  ;;  %v844_v52 = vmul.f32 %v1216_v13, %v2480_v0 }
  0xfc   : > { %v850_v18 = vsub.f32 1.1666666, %v2541_v19  ;;  %v962_v63 = vstv %s2917_s3  ;;  %v838_v62 = vadd.f32 %v834_v39, %v826_v10  ;;  %v852_v32 = vmul.f32 %v848_v11, %v2508_v60  ;;  %s2921_s3 = sld [smem:[#allocation21_spill]] }
  0xfd   : > { %v955_v55 = vadd.f32 %v954_v3, %v952_v29  ;;  %v960_v1 = vmul.f32 %v959_v56, %v836_v59  ;;  %v1219_v16 = vadd.f32 0.16666667, %v2544_v36  ;;  %v845_v48 = vmul.f32 %v1217_v8, %v2485_v38 }
  0xfe   : > { %v851_v49 = vsub.f32 1.1666666, %v2544_v36  ;;  %v965_v31 = vstv %s2918_s1  ;;  %v839_v51 = vadd.f32 %v835_v50, %v827_v34  ;;  %v853_v0 = vmul.f32 %v849_v5, %v2510_v37  ;;  %s2924_s1 = sld [smem:[#allocation23_spill]] }
  0xff   : > { %v958_v27 = vadd.f32 %v957_v45, %v955_v55  ;;  %v963_v28 = vmul.f32 %v962_v63, %v837_v4  ;;  %v846_v7 = vmul.f32 %v1218_v47, %v2498_v44  ;;  %v854_v23 = vmul.f32 %v850_v18, %v2514_v57  ;;  %v2922_v4 = vld [vmem:[#allocation31_spill] sm:$0xff] }
 0x100   : > { %v1220_v30 = vadd.f32 -0.16666667, %v2524_v22  ;;  %v968_v17 = vstv %s2919_s2  ;;  %v856_v15 = vadd.f32 %v852_v32, %v844_v52  ;;  %v868_v38 = vsub.f32 1.5, %v2524_v22  ;;  %s2923_s2 = sld [smem:[#allocation22_spill]] }
 0x101   : > { %v961_v43 = vadd.f32 %v960_v1, %v958_v27  ;;  %v966_v33 = vmul.f32 %v965_v31, %v838_v62  ;;  %v847_v58 = vmul.f32 %v1219_v16, %v2500_v20  ;;  %v855_v25 = vmul.f32 %v851_v49, %v2516_v9 }
 0x102   : > { %v1221_v26 = vadd.f32 -0.16666667, %v2530_v2  ;;  %v971_v53 = vstv %s2920_s30  ;;  %v857_v44 = vadd.f32 %v853_v0, %v845_v48  ;;  %v869_v24 = vsub.f32 1.5, %v2530_v2  ;;  %s2925_s30 = sshll.u32 %s1343_s7, 3  ;;  %s93_s7 = sadd.s32 1, %s1343_s7  }
 0x103   : > { %v964_v12 = vadd.f32 %v963_v28, %v961_v43  ;;  %v969_v35 = vmul.f32 %v968_v17, %v839_v51  ;;  %v1222_v10 = vadd.f32 -0.16666667, %v2541_v19  ;;  %v864_v39 = vmul.f32 %v1220_v30, %v2508_v60  ;;  %p90_p2 = scmp.ge.s32.totalorder %s93_s7, 2  }
 0x104   : > { %v870_v13 = vsub.f32 1.5, %v2541_v19  ;;  %v974_v61 = vstv %s2921_s3  ;;  %v858_v20 = vadd.f32 %v854_v23, %v846_v7  ;;  %v872_v59 = vmul.f32 %v868_v38, %v2536_v40  ;;  %s1007_s3 = scalar_lea.vmem [#allocation9], %s2925_s30 }
 0x105   : > { %v967_v11 = vadd.f32 %v966_v33, %v964_v12  ;;  %v972_v46 = vmul.f32 %v971_v53, %v856_v15  ;;  %v1223_v3 = vadd.f32 -0.16666667, %v2544_v36  ;;  %v865_v34 = vmul.f32 %v1221_v26, %v2510_v37 }
 0x106   : > { %v871_v50 = vsub.f32 1.5, %v2544_v36  ;;  %v977_v8 = vstv %s1454_s10  ;;  %v859_v56 = vadd.f32 %v855_v25, %v847_v58  ;;  %v873_v60 = vmul.f32 %v869_v24, %v2922_v4 }
 0x107   : > { %v970_v5 = vadd.f32 %v969_v35, %v967_v11  ;;  %v975_v29 = vmul.f32 %v974_v61, %v857_v44  ;;  %v866_v45 = vmul.f32 %v1222_v10, %v2514_v57  ;;  %v874_v47 = vmul.f32 %v870_v13, %v2558_v21 }
 0x108   : > { %v1224_v52 = vadd.f32 -0.5, %v2524_v22  ;;  %v980_v18 = vstv %s1456_s11  ;;  %v876_v63 = vadd.f32 %v872_v59, %v864_v39  ;;  %v888_v37 = vsub.f32 1.8333334, %v2524_v22 }
 0x109   : > { %v973_v62 = vadd.f32 %v972_v46, %v970_v5  ;;  %v978_v32 = vmul.f32 %v977_v8, %v858_v20  ;;  %v867_v55 = vmul.f32 %v1223_v3, %v2516_v9  ;;  %v875_v1 = vmul.f32 %v871_v50, %v2567_v6 }
 0x10a   : > { %v1225_v16 = vadd.f32 -0.5, %v2530_v2  ;;  %v983_v48 = vstv %s1458_s8  ;;  %v877_v57 = vadd.f32 %v873_v60, %v865_v34  ;;  %v889_v49 = vsub.f32 1.8333334, %v2530_v2 }
 0x10b   : > { %v976_v31 = vadd.f32 %v975_v29, %v973_v62  ;;  %v981_v51 = vmul.f32 %v980_v18, %v859_v56  ;;  %v878_v0 = vadd.f32 %v874_v47, %v866_v45  ;;  %v1226_v27 = vadd.f32 -0.5, %v2541_v19 }
 0x10c   : > { %v884_v22 = vmul.f32 %v1224_v52, %v2536_v40  ;;  %v986_v28 = vstv %s1460_s9  ;;  %v890_v9 = vsub.f32 1.8333334, %v2541_v19  ;;  %v892_v7 = vmul.f32 %v888_v37, %v2572_v54 }
 0x10d   : > { %v979_v23 = vadd.f32 %v978_v32, %v976_v31  ;;  %v984_v30 = vmul.f32 %v983_v48, %v876_v63  ;;  %v879_v17 = vadd.f32 %v875_v1, %v867_v55  ;;  %v1227_v15 = vadd.f32 -0.5, %v2544_v36 }
 0x10e   : > { %v885_v2 = vmul.f32 %v1225_v16, %v2922_v4  ;;  %v989_v38 = vstv %s2923_s2  ;;  %v891_v43 = vsub.f32 1.8333334, %v2544_v36  ;;  %v893_v33 = vmul.f32 %v889_v49, %v2574_v41  ;;  %s1351_s2 = smov (%p90_p2), [#allocation9]  }
 0x10f   : > { %v982_v40 = vadd.f32 %v981_v51, %v979_v23  ;;  %v987_v58 = vmul.f32 %v986_v28, %v877_v57  ;;  %v886_v19 = vmul.f32 %v1226_v27, %v2558_v21  ;;  %v992_v54 = vstv %s2924_s1  ;;  %s1014_s1 = sshll.u32 (%p90_p2), %s1351_s2, 4  ;;  %s1015_s1 = int_to_ptr.vmem [resolvable:$true] %s1014_s1 }
 0x110   : > { %v894_v25 = vmul.f32 %v890_v9, %v2576_v14  ;;  %v896_v26 = vadd.f32 %v892_v7, %v884_v22  ;;  %v990_v44 = vmul.f32 %v989_v38, %v878_v0  ;;  %v887_v24 = vmul.f32 %v1227_v15, %v2567_v6  ;;  %s1307_s30 = scalar_lea.vmem (%p90_p2), %s1015_s1, 256  ;;  %p1312_p4 = scmp.lt.s32.totalorder (%p90_p2), %s1015_s1, %s1015_s1 }
 0x111   : > { %v985_v53 = vadd.f32 %v984_v30, %v982_v40  ;;  %v995_v12 = vstv %s1466_s4  ;;  %v895_v36 = vmul.f32 %v891_v43, %v2578_v42  ;;  %v897_v35 = vadd.f32 %v893_v33, %v885_v2  ;;  %p1308_p3 = scmp.ne.s32.totalorder (%p90_p2), %s1015_s1, %s1307_s30  ;;  %p1313_p5 = scmp.lt.s32.totalorder (%p90_p2), %s1307_s30, %s1307_s30 }
 0x112   : > { %v993_v41 = vmul.f32 %v992_v54, %v879_v17  ;;  %v998_v39 = vstv %s1468_s5  ;;  %v898_v13 = vadd.f32 %v894_v25, %v886_v19  ;;  %v996_v61 = vmul.f32 %v995_v12, %v896_v26 }
 0x113   : > { %v988_v10 = vadd.f32 %v987_v58, %v985_v53  ;;  %v1001_v20 = vstv %s1470_s0  ;;  %v899_v59 = vadd.f32 %v895_v36, %v887_v24  ;;  %v999_v11 = vmul.f32 %v998_v39, %v897_v35  ;;  %p1314_p6 = por (%p90_p2), %p1313_p5, %p1312_p4 }
 0x114   : > { %v1004_v46 = vstv %s1472_s6  ;;  %v1002_v34 = vmul.f32 %v1001_v20, %v898_v13 }
 0x115   : > { %v991_v21 = vadd.f32 %v990_v44, %v988_v10  ;;  %v1005_v6 = vmul.f32 %v1004_v46, %v899_v59  ;;  %p1315_p7 = pnand (%p90_p2), %p1314_p6, %p1308_p3 }
 0x117   : > { %v994_v14 = vadd.f32 %v993_v41, %v991_v21 }
 0x119   : > { %v997_v3 = vadd.f32 %v996_v61, %v994_v14 }
 0x11b   : > { %v1000_v50 = vadd.f32 %v999_v11, %v997_v3  ;;  %92 = sbr.rel (!%p90_p2) target bundleno = 70 (0x46), region = 53 }
 0x11d   : > { %v1003_v8 = vadd.f32 %v1002_v34, %v1000_v50 }
 0x11f   : > { %v1006_v56 = vadd.f32 %v1005_v6, %v1003_v8 }
 0x121   : > { %1008 = vst [vmem:[%s1007_s3] sm:$0xff] %v1006_v56 }
 0x122   :  { %1318 = shalt.err (!%p1315_p7)
}
 0x123   :  { %s2926_s0 = sld [smem:[#allocation40_spill]] }
 0x129   :  { %s1319_s4 = scalar_lea.hbm %s2926_s0, 256 }
 0x12a   :  { %p1320_p8 = scmp.ne.s32.totalorder %s2926_s0, %s1319_s4  ;;  %p1323_p9 = scmp.lt.u32.totalorder %s1319_s4, %s2926_s0 }
 0x12c   :  { %p1325_p10 = pnand %p1323_p9, %p1320_p8 }
 0x12e   :  { %1328 = shalt.err (!%p1325_p10)
}
 0x12f   :  { %s2927_s12 = smov 8   ;;  %s2928_s13 = smov 128  }
 0x130   :  { %1020 = dma.vmem_to_hbm [thread:$0]  %s1015_s1, 256, %s2926_s0, [#allocation4], %s2928_s13, %s2928_s13, %s2927_s12  }
 0x131   :  { %1339 = dma.done.wait [#allocation4], 256  }
 0x132   :  { %1340 = vsyncadd [#allocation4], 4294967040 }
 0x133   :  { %1024 = vsyncpa [#allocation3], 1 }
 0x134   :  { %1025 = vsyncpa [#allocation4], 1 }
 0x135   :  { %1026 = vsyncpa [#allocation5], 1 }
 0x136   :  { %1027 = vsyncpa [#allocation6], 1 }

</bundles_post_ra>
